<compile_context>
chip_gen: v7x
topology: tpu7x:2x2x1
jax: 0.10.0
libtpu: 0.0.40
codegen_flags: <defaults>
</compile_context>

<pallas_src>
import math

import jax
import jax.numpy as jnp
from jax import lax
from jax.experimental import pallas as pl
from jax.experimental.pallas import tpu as pltpu  # noqa: F401  (TPU backend)

# ------------------------- small GPT-2 configuration -------------------------
HIDDEN = 32          # n_embd
NUM_LAYERS = 2       # n_layer
NUM_HEADS = 2        # n_head
HEAD_DIM = HIDDEN // NUM_HEADS
MAX_SEQ = 16         # n_positions
VOCAB = 64           # vocab_size
VOCAB_PAD = 128      # logits padded to 128 lanes (lane-dense output)
BATCH = 2
SEQ = 8
LN_EPS = 1e-5
GELU_C = 0.7978845608028654  # sqrt(2/pi)
NEG_BIG = -1e9       # bounded masking constant (avoids -inf arithmetic)

LANES = 128

# ----- packed f32 vector slab layout: one 128-lane row per small parameter ----
VEC_ROWS_PER_LAYER = 8       # ln1_w, ln1_b, qkv_b, aproj_b, ln2_w, ln2_b, fc_b, fproj_b
VEC_LNF_ROW = NUM_LAYERS * VEC_ROWS_PER_LAYER          # lnf_w, lnf_b follow
VEC_ROWS = ((NUM_LAYERS * VEC_ROWS_PER_LAYER + 2 + 7) // 8) * 8

# ----- packed bf16 weight slab layout: all matrices padded to 128 columns -----
QKV_OFF = 0                      # (H, 128)  (3H=96 real cols, 32 zero cols)
APROJ_OFF = HIDDEN               # (H, 128)  (H=32 real cols)
FC_OFF = 2 * HIDDEN              # (H, 128)  (4H=128 cols)
FPROJ_OFF = 3 * HIDDEN           # (4H, 128) (H=32 real cols)
LAYER_W_ROWS = 3 * HIDDEN + 4 * HIDDEN        # 224 rows per layer
WTE_OFF = NUM_LAYERS * LAYER_W_ROWS           # tied lm_head: wte^T padded (H, 128)
W_ROWS = WTE_OFF + HIDDEN


# ------------------------------ shared math ----------------------------------
def _layer_norm(x, w, b, eps=LN_EPS):
    mu = jnp.mean(x, axis=-1, keepdims=True)
    var = jnp.mean(jnp.square(x - mu), axis=-1, keepdims=True)
    return (x - mu) * lax.rsqrt(var + eps) * w + b


def _gelu_new(x):
    # GPT-2 "gelu_new" (tanh approximation)
    return 0.5 * x * (1.0 + jnp.tanh(GELU_C * (x + 0.044715 * x * x * x)))


# --------------------------- fused Pallas kernel ------------------------------
def gpt2_forward_kernel(h0_ref, bias_ref, vec_ref, w_ref, logits_ref):
    Q, H = h0_ref.shape                 # (B*S, HIDDEN) — batch folded into rows
    hd, NH = HEAD_DIM, NUM_HEADS
    scale = 1.0 / math.sqrt(hd)
    bf16 = jnp.bfloat16

    hf = h0_ref[...]                    # (Q, H) f32 residual stream
    bias = bias_ref[...]                # (Q, Q) f32 hoisted attention bias

    for l in range(NUM_LAYERS):         # static unroll (NUM_LAYERS == 2)
        vb = l * VEC_ROWS_PER_LAYER
        wb = l * LAYER_W_ROWS
        ln1_w = vec_ref[vb + 0:vb + 1, :H]
        ln1_b = vec_ref[vb + 1:vb + 2, :H]
        qkv_b = vec_ref[vb + 2:vb + 3, :]        # (1, 128)
        aproj_b = vec_ref[vb + 3:vb + 4, :]      # (1, 128)
        ln2_w = vec_ref[vb + 4:vb + 5, :H]
        ln2_b = vec_ref[vb + 5:vb + 6, :H]
        fc_b = vec_ref[vb + 6:vb + 7, :]         # (1, 128)
        fproj_b = vec_ref[vb + 7:vb + 8, :]      # (1, 128)

        # ----------------------------- attention -----------------------------
        x = _layer_norm(hf, ln1_w, ln1_b)
        qkv = jnp.dot(x.astype(bf16), w_ref[wb + QKV_OFF:wb + QKV_OFF + H, :],
                      preferred_element_type=jnp.float32) + qkv_b      # (Q, 128)
        q = qkv[:, 0:H] * scale
        k = qkv[:, H:2 * H]
        v = qkv[:, 2 * H:3 * H]
        # split heads -> (NH, Q, hd) and do ONE batched score / ctx einsum pair
        qh = jnp.stack([q[:, h * hd:(h + 1) * hd] for h in range(NH)], 0).astype(bf16)
        kh = jnp.stack([k[:, h * hd:(h + 1) * hd] for h in range(NH)], 0).astype(bf16)
        vh = jnp.stack([v[:, h * hd:(h + 1) * hd] for h in range(NH)], 0).astype(bf16)
        sc = jnp.einsum('hqd,hkd->hqk', qh, kh,
                        preferred_element_type=jnp.float32) + bias[None]
        sc = sc - jnp.max(sc, axis=-1, keepdims=True)
        p = jnp.exp(sc)
        p = p * pl.reciprocal(jnp.sum(p, axis=-1, keepdims=True), approx=True)
        ctx = jnp.einsum('hqk,hkd->hqd', p.astype(bf16), vh,
                         preferred_element_type=jnp.float32)           # (NH, Q, hd)
        # merge heads and project with a single matmul
        ctx2 = jnp.concatenate([ctx[h] for h in range(NH)], axis=1)    # (Q, H)
        attn = jnp.dot(ctx2.astype(bf16), w_ref[wb + APROJ_OFF:wb + APROJ_OFF + H, :],
                       preferred_element_type=jnp.float32) + aproj_b   # (Q, 128)
        hf = hf + attn[:, :H]

        # -------------------------------- MLP --------------------------------
        x = _layer_norm(hf, ln2_w, ln2_b)
        ff = jnp.dot(x.astype(bf16), w_ref[wb + FC_OFF:wb + FC_OFF + H, :],
                     preferred_element_type=jnp.float32) + fc_b        # (Q, 4H)
        ff = _gelu_new(ff)
        mo = jnp.dot(ff.astype(bf16), w_ref[wb + FPROJ_OFF:wb + FPROJ_OFF + 4 * H, :],
                     preferred_element_type=jnp.float32) + fproj_b     # (Q, 128)
        hf = hf + mo[:, :H]

    # ---------------- final LayerNorm + tied lm_head (fused) ----------------
    hn = _layer_norm(hf, vec_ref[VEC_LNF_ROW:VEC_LNF_ROW + 1, :H],
                     vec_ref[VEC_LNF_ROW + 1:VEC_LNF_ROW + 2, :H])
    logits_ref[...] = jnp.dot(hn.astype(bf16), w_ref[WTE_OFF:WTE_OFF + H, :],
                              preferred_element_type=jnp.float32)


# ------------------------- one-time parameter packing -------------------------
def pack_params(params):
    f32, bf16 = jnp.float32, jnp.bfloat16

    def vrow(v):
        return jnp.pad(v.astype(f32), (0, LANES - v.shape[0]))

    rows = []
    for lp in params["layers"]:
        rows += [vrow(lp["ln1_w"]), vrow(lp["ln1_b"]), vrow(lp["qkv_b"]),
                 vrow(lp["aproj_b"]), vrow(lp["ln2_w"]), vrow(lp["ln2_b"]),
                 vrow(lp["fc_b"]), vrow(lp["fproj_b"])]
    rows += [vrow(params["lnf_w"]), vrow(params["lnf_b"])]
    while len(rows) < VEC_ROWS:
        rows.append(jnp.zeros((LANES,), f32))
    vec_slab = jnp.stack(rows, axis=0)

    def wpad(m):
        return jnp.pad(m, ((0, 0), (0, LANES - m.shape[1])))

    blocks = []
    for lp in params["layers"]:
        blocks += [wpad(lp["qkv_w"]), wpad(lp["aproj_w"]),
                   wpad(lp["fc_w"]), wpad(lp["fproj_w"])]
    wte_t = jnp.pad(params["wte"], ((0, VOCAB_PAD - VOCAB), (0, 0))).T   # (H, 128)
    blocks.append(wte_t)
    w_slab = jnp.concatenate(blocks, axis=0).astype(bf16)

    assert vec_slab.shape == (VEC_ROWS, LANES)
    assert w_slab.shape == (W_ROWS, LANES)
    return {"vec": vec_slab, "w": w_slab,
            "wte": params["wte"].astype(f32), "wpe": params["wpe"].astype(f32)}


# ------------------------------ jitted wrapper ---------------------------------
@jax.jit
def gpt_lm_forward(packed, input_ids, attention_mask):
    B, S = input_ids.shape
    Q = B * S
    # glue (plain XLA): embedding gather + flatten batch into the row dim
    h0 = (packed["wte"][input_ids] + packed["wpe"][:S][None, :, :])
    h0 = h0.reshape(Q, HIDDEN).astype(jnp.float32)

    # hoisted (Q, Q) attention bias: block-diagonal across batch + causal + key padding
    bidx = jnp.arange(Q, dtype=jnp.int32) // S
    pidx = jnp.arange(Q, dtype=jnp.int32) % S
    keymask = attention_mask.reshape(Q)
    allowed = ((bidx[:, None] == bidx[None, :])
               & (pidx[None, :] <= pidx[:, None])
               & (keymask[None, :] > 0))
    bias = jnp.where(allowed, 0.0, NEG_BIG).astype(jnp.float32)

    # single grid-less pallas_call: 4 VMEM-resident inputs, no pipelining/double
    # buffering needed. TODO(synk): at real GPT-2 sizes, stream per-layer weight
    # slabs (grid axis over layers) and add a "parallel" row-tile axis for v7x.
    logits_pad = pl.pallas_call(
        gpt2_forward_kernel,
        out_shape=jax.ShapeDtypeStruct((Q, VOCAB_PAD), jnp.float32),
    )(h0, bias, packed["vec"], packed["w"])

    return logits_pad[:, :VOCAB].reshape(B, S, VOCAB)


# ----------------------- pure-JAX f32 reference (for checking) ----------------
def reference_forward(params, input_ids, attention_mask):
    B, S = input_ids.shape
    h = params["wte"][input_ids] + params["wpe"][:S][None, :, :]
    mask_add = (1.0 - attention_mask.astype(jnp.float32)) * NEG_BIG
    causal = jnp.tril(jnp.ones((S, S), dtype=bool))
    causal_bias = jnp.where(causal, 0.0, NEG_BIG)
    for lp in params["layers"]:
        x = _layer_norm(h, lp["ln1_w"], lp["ln1_b"])
        qkv = x @ lp["qkv_w"] + lp["qkv_b"]
        q, k, v = jnp.split(qkv, 3, axis=-1)
        q = q.reshape(B, S, NUM_HEADS, HEAD_DIM).transpose(0, 2, 1, 3)
        k = k.reshape(B, S, NUM_HEADS, HEAD_DIM).transpose(0, 2, 1, 3)
        v = v.reshape(B, S, NUM_HEADS, HEAD_DIM).transpose(0, 2, 1, 3)
        sc = (q @ k.transpose(0, 1, 3, 2)) / math.sqrt(HEAD_DIM)
        sc = sc + causal_bias[None, None] + mask_add[:, None, None, :]
        p = jax.nn.softmax(sc, axis=-1)
        ctx = (p @ v).transpose(0, 2, 1, 3).reshape(B, S, HIDDEN)
        h = h + ctx @ lp["aproj_w"] + lp["aproj_b"]
        x = _layer_norm(h, lp["ln2_w"], lp["ln2_b"])
        ff = _gelu_new(x @ lp["fc_w"] + lp["fc_b"])
        h = h + ff @ lp["fproj_w"] + lp["fproj_b"]
    h = _layer_norm(h, params["lnf_w"], params["lnf_b"])
    return h @ params["wte"].T


# ------------------------------- params ---------------------------------------
def init_params(key):
    std = 0.02
    keys = jax.random.split(key, 2 + 4 * NUM_LAYERS)
    params = {
        "wte": jax.random.normal(keys[0], (VOCAB, HIDDEN), jnp.float32) * std,
        "wpe": jax.random.normal(keys[1], (MAX_SEQ, HIDDEN), jnp.float32) * std,
        "lnf_w": jnp.ones((HIDDEN,), jnp.float32),
        "lnf_b": jnp.zeros((HIDDEN,), jnp.float32),
        "layers": [],
    }
    for l in range(NUM_LAYERS):
        kq, ka, kf, kp = keys[2 + 4 * l: 2 + 4 * (l + 1)]
        params["layers"].append({
            "ln1_w": jnp.ones((HIDDEN,), jnp.float32),
            "ln1_b": jnp.zeros((HIDDEN,), jnp.float32),
            "qkv_w": jax.random.normal(kq, (HIDDEN, 3 * HIDDEN), jnp.float32) * std,
            "qkv_b": jnp.zeros((3 * HIDDEN,), jnp.float32),
            "aproj_w": jax.random.normal(ka, (HIDDEN, HIDDEN), jnp.float32) * std,
            "aproj_b": jnp.zeros((HIDDEN,), jnp.float32),
            "ln2_w": jnp.ones((HIDDEN,), jnp.float32),
            "ln2_b": jnp.zeros((HIDDEN,), jnp.float32),
            "fc_w": jax.random.normal(kf, (HIDDEN, 4 * HIDDEN), jnp.float32) * std,
            "fc_b": jnp.zeros((4 * HIDDEN,), jnp.float32),
            "fproj_w": jax.random.normal(kp, (4 * HIDDEN, HIDDEN), jnp.float32) * std,
            "fproj_b": jnp.zeros((HIDDEN,), jnp.float32),
        })
    return params


# --------------------------------- main ----------------------------------------
if __name__ == "__main__":
    key = jax.random.PRNGKey(0)
    k_param, k_ids = jax.random.split(key)
    params = init_params(k_param)
    packed = pack_params(params)          # one-time weight packing (off critical path)

    input_ids = jax.random.randint(k_ids, (BATCH, SEQ), 0, VOCAB, dtype=jnp.int32)
    # second sequence has 2 padding tokens at the end
    attention_mask = jnp.array(
        [[1] * SEQ, [1] * (SEQ - 2) + [0] * 2], dtype=jnp.int32)

    logits = gpt_lm_forward(packed, input_ids, attention_mask)
    logits = jax.block_until_ready(logits)
    assert logits.shape == (BATCH, SEQ, VOCAB)

    ref = reference_forward(params, input_ids, attention_mask)
    max_err = float(jnp.max(jnp.abs(logits - ref)))
    # bf16 MXU operands with f32 accumulation -> slightly relaxed tolerance
    if not bool(jnp.allclose(logits, ref, atol=5e-3, rtol=5e-3)):
        raise SystemExit(f"mismatch vs reference, max abs err = {max_err:e}")

    print("KERNEL_OK")
</pallas_src>

<mosaic_0001>
module attributes {stable_mosaic.version = 11 : i64} {
  func.func @gpt2_forward_kernel(%arg0: memref<16x32xf32, #tpu.memory_space<vmem>>, %arg1: memref<16x16xf32, #tpu.memory_space<vmem>>, %arg2: memref<24x128xf32, #tpu.memory_space<vmem>>, %arg3: memref<480x128xbf16, #tpu.memory_space<vmem>>, %arg4: memref<16x128xf32, #tpu.memory_space<vmem>>) attributes {dimension_semantics = [], scalar_prefetch = 0 : i64, scratch_operands = 0 : i64, tpu.core_type = #tpu.core_type<tc>} {
    %c0 = arith.constant 0 : index
    %c0_0 = arith.constant 0 : index
    %0 = vector.load %arg0[%c0, %c0_0] : memref<16x32xf32, #tpu.memory_space<vmem>>, vector<16x32xf32>
    %c0_1 = arith.constant 0 : index
    %c0_2 = arith.constant 0 : index
    %1 = vector.load %arg1[%c0_1, %c0_2] : memref<16x16xf32, #tpu.memory_space<vmem>>, vector<16x16xf32>
    %c0_3 = arith.constant 0 : index
    %c0_4 = arith.constant 0 : index
    %2 = vector.load %arg2[%c0_3, %c0_4] : memref<24x128xf32, #tpu.memory_space<vmem>>, vector<1x32xf32>
    %c1 = arith.constant 1 : index
    %c0_5 = arith.constant 0 : index
    %3 = vector.load %arg2[%c1, %c0_5] : memref<24x128xf32, #tpu.memory_space<vmem>>, vector<1x32xf32>
    %c2 = arith.constant 2 : index
    %c0_6 = arith.constant 0 : index
    %4 = vector.load %arg2[%c2, %c0_6] : memref<24x128xf32, #tpu.memory_space<vmem>>, vector<1x128xf32>
    %c3 = arith.constant 3 : index
    %c0_7 = arith.constant 0 : index
    %5 = vector.load %arg2[%c3, %c0_7] : memref<24x128xf32, #tpu.memory_space<vmem>>, vector<1x128xf32>
    %c4 = arith.constant 4 : index
    %c0_8 = arith.constant 0 : index
    %6 = vector.load %arg2[%c4, %c0_8] : memref<24x128xf32, #tpu.memory_space<vmem>>, vector<1x32xf32>
    %c5 = arith.constant 5 : index
    %c0_9 = arith.constant 0 : index
    %7 = vector.load %arg2[%c5, %c0_9] : memref<24x128xf32, #tpu.memory_space<vmem>>, vector<1x32xf32>
    %c6 = arith.constant 6 : index
    %c0_10 = arith.constant 0 : index
    %8 = vector.load %arg2[%c6, %c0_10] : memref<24x128xf32, #tpu.memory_space<vmem>>, vector<1x128xf32>
    %c7 = arith.constant 7 : index
    %c0_11 = arith.constant 0 : index
    %9 = vector.load %arg2[%c7, %c0_11] : memref<24x128xf32, #tpu.memory_space<vmem>>, vector<1x128xf32>
    %cst = arith.constant dense<0.000000e+00> : vector<16xf32>
    %10 = vector.multi_reduction <add>, %0, %cst [1] : vector<16x32xf32> to vector<16xf32>
    %11 = vector.shape_cast %10 : vector<16xf32> to vector<16x1xf32>
    %cst_12 = arith.constant 3.200000e+01 : f32
    %12 = vector.broadcast %cst_12 : f32 to vector<16x1xf32>
    %13 = arith.divf %11, %12 : vector<16x1xf32>
    %14 = vector.broadcast %13 : vector<16x1xf32> to vector<16x32xf32>
    %15 = arith.subf %0, %14 : vector<16x32xf32>
    %16 = arith.mulf %15, %15 : vector<16x32xf32>
    %cst_13 = arith.constant dense<0.000000e+00> : vector<16xf32>
    %17 = vector.multi_reduction <add>, %16, %cst_13 [1] : vector<16x32xf32> to vector<16xf32>
    %18 = vector.shape_cast %17 : vector<16xf32> to vector<16x1xf32>
    %cst_14 = arith.constant 3.200000e+01 : f32
    %19 = vector.broadcast %cst_14 : f32 to vector<16x1xf32>
    %20 = arith.divf %18, %19 : vector<16x1xf32>
    %21 = vector.broadcast %13 : vector<16x1xf32> to vector<16x32xf32>
    %22 = arith.subf %0, %21 : vector<16x32xf32>
    %cst_15 = arith.constant 9.99999974E-6 : f32
    %23 = vector.broadcast %cst_15 : f32 to vector<16x1xf32>
    %24 = arith.addf %20, %23 : vector<16x1xf32>
    %25 = math.rsqrt %24 : vector<16x1xf32>
    %26 = vector.broadcast %25 : vector<16x1xf32> to vector<16x32xf32>
    %27 = arith.mulf %22, %26 : vector<16x32xf32>
    %28 = vector.broadcast %2 : vector<1x32xf32> to vector<16x32xf32>
    %29 = arith.mulf %27, %28 : vector<16x32xf32>
    %30 = vector.broadcast %3 : vector<1x32xf32> to vector<16x32xf32>
    %31 = arith.addf %29, %30 : vector<16x32xf32>
    %32 = arith.truncf %31 : vector<16x32xf32> to vector<16x32xbf16>
    %c0_16 = arith.constant 0 : index
    %c0_17 = arith.constant 0 : index
    %33 = vector.load %arg3[%c0_16, %c0_17] : memref<480x128xbf16, #tpu.memory_space<vmem>>, vector<32x128xbf16>
    %cst_18 = arith.constant dense<0.000000e+00> : vector<16x128xf32>
    %34 = tpu.matmul %32, %33, %cst_18 {dimension_numbers = #tpu.dot_dimension_numbers<[1], [0], [0], [1], [0, 0, 1, 1], [], []>} : vector<16x32xbf16>, vector<32x128xbf16>, vector<16x128xf32> -> vector<16x128xf32>
    %35 = vector.broadcast %4 : vector<1x128xf32> to vector<16x128xf32>
    %36 = arith.addf %34, %35 : vector<16x128xf32>
    %37 = vector.extract_strided_slice %36 {offsets = [0, 0], sizes = [16, 32], strides = [1, 1]} : vector<16x128xf32> to vector<16x32xf32>
    %cst_19 = arith.constant 2.500000e-01 : f32
    %38 = vector.broadcast %cst_19 : f32 to vector<16x32xf32>
    %39 = arith.mulf %37, %38 : vector<16x32xf32>
    %40 = vector.extract_strided_slice %36 {offsets = [0, 32], sizes = [16, 32], strides = [1, 1]} : vector<16x128xf32> to vector<16x32xf32>
    %41 = vector.extract_strided_slice %36 {offsets = [0, 64], sizes = [16, 32], strides = [1, 1]} : vector<16x128xf32> to vector<16x32xf32>
    %42 = vector.extract_strided_slice %39 {offsets = [0, 0], sizes = [16, 16], strides = [1, 1]} : vector<16x32xf32> to vector<16x16xf32>
    %43 = vector.extract_strided_slice %39 {offsets = [0, 16], sizes = [16, 16], strides = [1, 1]} : vector<16x32xf32> to vector<16x16xf32>
    %44 = vector.shape_cast %42 : vector<16x16xf32> to vector<1x16x16xf32>
    %45 = vector.shape_cast %43 : vector<16x16xf32> to vector<1x16x16xf32>
    %46 = tpu.concatenate %44, %45 in 0 : vector<1x16x16xf32>, vector<1x16x16xf32> -> vector<2x16x16xf32>
    %47 = arith.truncf %46 : vector<2x16x16xf32> to vector<2x16x16xbf16>
    %48 = vector.extract_strided_slice %40 {offsets = [0, 0], sizes = [16, 16], strides = [1, 1]} : vector<16x32xf32> to vector<16x16xf32>
    %49 = vector.extract_strided_slice %40 {offsets = [0, 16], sizes = [16, 16], strides = [1, 1]} : vector<16x32xf32> to vector<16x16xf32>
    %50 = vector.shape_cast %48 : vector<16x16xf32> to vector<1x16x16xf32>
    %51 = vector.shape_cast %49 : vector<16x16xf32> to vector<1x16x16xf32>
    %52 = tpu.concatenate %50, %51 in 0 : vector<1x16x16xf32>, vector<1x16x16xf32> -> vector<2x16x16xf32>
    %53 = arith.truncf %52 : vector<2x16x16xf32> to vector<2x16x16xbf16>
    %54 = vector.extract_strided_slice %41 {offsets = [0, 0], sizes = [16, 16], strides = [1, 1]} : vector<16x32xf32> to vector<16x16xf32>
    %55 = vector.extract_strided_slice %41 {offsets = [0, 16], sizes = [16, 16], strides = [1, 1]} : vector<16x32xf32> to vector<16x16xf32>
    %56 = vector.shape_cast %54 : vector<16x16xf32> to vector<1x16x16xf32>
    %57 = vector.shape_cast %55 : vector<16x16xf32> to vector<1x16x16xf32>
    %58 = tpu.concatenate %56, %57 in 0 : vector<1x16x16xf32>, vector<1x16x16xf32> -> vector<2x16x16xf32>
    %59 = arith.truncf %58 : vector<2x16x16xf32> to vector<2x16x16xbf16>
    "tpu.trace_start"() <{level = 10 : i32, message = "hqd,hkd->hqk"}> : () -> ()
    %cst_20 = arith.constant dense<0.000000e+00> : vector<2x16x16xf32>
    %60 = tpu.matmul %47, %53, %cst_20 {dimension_numbers = #tpu.dot_dimension_numbers<[2], [2], [1], [1], [0, 0, 0, 1, 1, 1], [0], [0]>} : vector<2x16x16xbf16>, vector<2x16x16xbf16>, vector<2x16x16xf32> -> vector<2x16x16xf32>
    "tpu.trace_stop"() : () -> ()
    %61 = vector.shape_cast %1 : vector<16x16xf32> to vector<1x16x16xf32>
    %62 = vector.broadcast %61 : vector<1x16x16xf32> to vector<2x16x16xf32>
    %63 = arith.addf %60, %62 : vector<2x16x16xf32>
    %cst_21 = arith.constant dense<0xFF800000> : vector<2x16xf32>
    %64 = vector.multi_reduction <maximumf>, %63, %cst_21 [2] : vector<2x16x16xf32> to vector<2x16xf32>
    %65 = vector.shape_cast %64 : vector<2x16xf32> to vector<2x16x1xf32>
    %66 = vector.broadcast %65 : vector<2x16x1xf32> to vector<2x16x16xf32>
    %67 = arith.subf %63, %66 : vector<2x16x16xf32>
    %68 = math.exp %67 : vector<2x16x16xf32>
    %cst_22 = arith.constant dense<0.000000e+00> : vector<2x16xf32>
    %69 = vector.multi_reduction <add>, %68, %cst_22 [2] : vector<2x16x16xf32> to vector<2x16xf32>
    %70 = vector.shape_cast %69 : vector<2x16xf32> to vector<2x16x1xf32>
    %71 = tpu.reciprocal %70 {approx = true} : vector<2x16x1xf32> -> vector<2x16x1xf32>
    %72 = vector.broadcast %71 : vector<2x16x1xf32> to vector<2x16x16xf32>
    %73 = arith.mulf %68, %72 : vector<2x16x16xf32>
    %74 = arith.truncf %73 : vector<2x16x16xf32> to vector<2x16x16xbf16>
    "tpu.trace_start"() <{level = 10 : i32, message = "hqk,hkd->hqd"}> : () -> ()
    %cst_23 = arith.constant dense<0.000000e+00> : vector<2x16x16xf32>
    %75 = tpu.matmul %74, %59, %cst_23 {dimension_numbers = #tpu.dot_dimension_numbers<[2], [1], [1], [2], [0, 0, 0, 1, 1, 2], [0], [0]>} : vector<2x16x16xbf16>, vector<2x16x16xbf16>, vector<2x16x16xf32> -> vector<2x16x16xf32>
    "tpu.trace_stop"() : () -> ()
    %76 = vector.extract_strided_slice %75 {offsets = [0, 0, 0], sizes = [1, 16, 16], strides = [1, 1, 1]} : vector<2x16x16xf32> to vector<1x16x16xf32>
    %77 = vector.shape_cast %76 : vector<1x16x16xf32> to vector<16x16xf32>
    %78 = vector.extract_strided_slice %75 {offsets = [1, 0, 0], sizes = [1, 16, 16], strides = [1, 1, 1]} : vector<2x16x16xf32> to vector<1x16x16xf32>
    %79 = vector.shape_cast %78 : vector<1x16x16xf32> to vector<16x16xf32>
    %80 = tpu.concatenate %77, %79 in 1 : vector<16x16xf32>, vector<16x16xf32> -> vector<16x32xf32>
    %81 = arith.truncf %80 : vector<16x32xf32> to vector<16x32xbf16>
    %c32 = arith.constant 32 : index
    %c0_24 = arith.constant 0 : index
    %82 = vector.load %arg3[%c32, %c0_24] : memref<480x128xbf16, #tpu.memory_space<vmem>>, vector<32x128xbf16>
    %cst_25 = arith.constant dense<0.000000e+00> : vector<16x128xf32>
    %83 = tpu.matmul %81, %82, %cst_25 {dimension_numbers = #tpu.dot_dimension_numbers<[1], [0], [0], [1], [0, 0, 1, 1], [], []>} : vector<16x32xbf16>, vector<32x128xbf16>, vector<16x128xf32> -> vector<16x128xf32>
    %84 = vector.broadcast %5 : vector<1x128xf32> to vector<16x128xf32>
    %85 = arith.addf %83, %84 : vector<16x128xf32>
    %86 = vector.extract_strided_slice %85 {offsets = [0, 0], sizes = [16, 32], strides = [1, 1]} : vector<16x128xf32> to vector<16x32xf32>
    %87 = arith.addf %0, %86 : vector<16x32xf32>
    %cst_26 = arith.constant dense<0.000000e+00> : vector<16xf32>
    %88 = vector.multi_reduction <add>, %87, %cst_26 [1] : vector<16x32xf32> to vector<16xf32>
    %89 = vector.shape_cast %88 : vector<16xf32> to vector<16x1xf32>
    %cst_27 = arith.constant 3.200000e+01 : f32
    %90 = vector.broadcast %cst_27 : f32 to vector<16x1xf32>
    %91 = arith.divf %89, %90 : vector<16x1xf32>
    %92 = vector.broadcast %91 : vector<16x1xf32> to vector<16x32xf32>
    %93 = arith.subf %87, %92 : vector<16x32xf32>
    %94 = arith.mulf %93, %93 : vector<16x32xf32>
    %cst_28 = arith.constant dense<0.000000e+00> : vector<16xf32>
    %95 = vector.multi_reduction <add>, %94, %cst_28 [1] : vector<16x32xf32> to vector<16xf32>
    %96 = vector.shape_cast %95 : vector<16xf32> to vector<16x1xf32>
    %cst_29 = arith.constant 3.200000e+01 : f32
    %97 = vector.broadcast %cst_29 : f32 to vector<16x1xf32>
    %98 = arith.divf %96, %97 : vector<16x1xf32>
    %99 = vector.broadcast %91 : vector<16x1xf32> to vector<16x32xf32>
    %100 = arith.subf %87, %99 : vector<16x32xf32>
    %cst_30 = arith.constant 9.99999974E-6 : f32
    %101 = vector.broadcast %cst_30 : f32 to vector<16x1xf32>
    %102 = arith.addf %98, %101 : vector<16x1xf32>
    %103 = math.rsqrt %102 : vector<16x1xf32>
    %104 = vector.broadcast %103 : vector<16x1xf32> to vector<16x32xf32>
    %105 = arith.mulf %100, %104 : vector<16x32xf32>
    %106 = vector.broadcast %6 : vector<1x32xf32> to vector<16x32xf32>
    %107 = arith.mulf %105, %106 : vector<16x32xf32>
    %108 = vector.broadcast %7 : vector<1x32xf32> to vector<16x32xf32>
    %109 = arith.addf %107, %108 : vector<16x32xf32>
    %110 = arith.truncf %109 : vector<16x32xf32> to vector<16x32xbf16>
    %c64 = arith.constant 64 : index
    %c0_31 = arith.constant 0 : index
    %111 = vector.load %arg3[%c64, %c0_31] : memref<480x128xbf16, #tpu.memory_space<vmem>>, vector<32x128xbf16>
    %cst_32 = arith.constant dense<0.000000e+00> : vector<16x128xf32>
    %112 = tpu.matmul %110, %111, %cst_32 {dimension_numbers = #tpu.dot_dimension_numbers<[1], [0], [0], [1], [0, 0, 1, 1], [], []>} : vector<16x32xbf16>, vector<32x128xbf16>, vector<16x128xf32> -> vector<16x128xf32>
    %113 = vector.broadcast %8 : vector<1x128xf32> to vector<16x128xf32>
    %114 = arith.addf %112, %113 : vector<16x128xf32>
    %cst_33 = arith.constant 5.000000e-01 : f32
    %115 = vector.broadcast %cst_33 : f32 to vector<16x128xf32>
    %116 = arith.mulf %115, %114 : vector<16x128xf32>
    %cst_34 = arith.constant 4.471500e-02 : f32
    %117 = vector.broadcast %cst_34 : f32 to vector<16x128xf32>
    %118 = arith.mulf %117, %114 : vector<16x128xf32>
    %119 = arith.mulf %118, %114 : vector<16x128xf32>
    %120 = arith.mulf %119, %114 : vector<16x128xf32>
    %121 = arith.addf %114, %120 : vector<16x128xf32>
    %cst_35 = arith.constant 0.797884583 : f32
    %122 = vector.broadcast %cst_35 : f32 to vector<16x128xf32>
    %123 = arith.mulf %122, %121 : vector<16x128xf32>
    %124 = math.tanh %123 : vector<16x128xf32>
    %cst_36 = arith.constant 1.000000e+00 : f32
    %125 = vector.broadcast %cst_36 : f32 to vector<16x128xf32>
    %126 = arith.addf %125, %124 : vector<16x128xf32>
    %127 = arith.mulf %116, %126 : vector<16x128xf32>
    %128 = arith.truncf %127 : vector<16x128xf32> to vector<16x128xbf16>
    %c96 = arith.constant 96 : index
    %c0_37 = arith.constant 0 : index
    %129 = vector.load %arg3[%c96, %c0_37] : memref<480x128xbf16, #tpu.memory_space<vmem>>, vector<128x128xbf16>
    %cst_38 = arith.constant dense<0.000000e+00> : vector<16x128xf32>
    %130 = tpu.matmul %128, %129, %cst_38 {dimension_numbers = #tpu.dot_dimension_numbers<[1], [0], [0], [1], [0, 0, 1, 1], [], []>} : vector<16x128xbf16>, vector<128x128xbf16>, vector<16x128xf32> -> vector<16x128xf32>
    %131 = vector.broadcast %9 : vector<1x128xf32> to vector<16x128xf32>
    %132 = arith.addf %130, %131 : vector<16x128xf32>
    %133 = vector.extract_strided_slice %132 {offsets = [0, 0], sizes = [16, 32], strides = [1, 1]} : vector<16x128xf32> to vector<16x32xf32>
    %134 = arith.addf %87, %133 : vector<16x32xf32>
    %c8 = arith.constant 8 : index
    %c0_39 = arith.constant 0 : index
    %135 = vector.load %arg2[%c8, %c0_39] : memref<24x128xf32, #tpu.memory_space<vmem>>, vector<1x32xf32>
    %c9 = arith.constant 9 : index
    %c0_40 = arith.constant 0 : index
    %136 = vector.load %arg2[%c9, %c0_40] : memref<24x128xf32, #tpu.memory_space<vmem>>, vector<1x32xf32>
    %c10 = arith.constant 10 : index
    %c0_41 = arith.constant 0 : index
    %137 = vector.load %arg2[%c10, %c0_41] : memref<24x128xf32, #tpu.memory_space<vmem>>, vector<1x128xf32>
    %c11 = arith.constant 11 : index
    %c0_42 = arith.constant 0 : index
    %138 = vector.load %arg2[%c11, %c0_42] : memref<24x128xf32, #tpu.memory_space<vmem>>, vector<1x128xf32>
    %c12 = arith.constant 12 : index
    %c0_43 = arith.constant 0 : index
    %139 = vector.load %arg2[%c12, %c0_43] : memref<24x128xf32, #tpu.memory_space<vmem>>, vector<1x32xf32>
    %c13 = arith.constant 13 : index
    %c0_44 = arith.constant 0 : index
    %140 = vector.load %arg2[%c13, %c0_44] : memref<24x128xf32, #tpu.memory_space<vmem>>, vector<1x32xf32>
    %c14 = arith.constant 14 : index
    %c0_45 = arith.constant 0 : index
    %141 = vector.load %arg2[%c14, %c0_45] : memref<24x128xf32, #tpu.memory_space<vmem>>, vector<1x128xf32>
    %c15 = arith.constant 15 : index
    %c0_46 = arith.constant 0 : index
    %142 = vector.load %arg2[%c15, %c0_46] : memref<24x128xf32, #tpu.memory_space<vmem>>, vector<1x128xf32>
    %cst_47 = arith.constant dense<0.000000e+00> : vector<16xf32>
    %143 = vector.multi_reduction <add>, %134, %cst_47 [1] : vector<16x32xf32> to vector<16xf32>
    %144 = vector.shape_cast %143 : vector<16xf32> to vector<16x1xf32>
    %cst_48 = arith.constant 3.200000e+01 : f32
    %145 = vector.broadcast %cst_48 : f32 to vector<16x1xf32>
    %146 = arith.divf %144, %145 : vector<16x1xf32>
    %147 = vector.broadcast %146 : vector<16x1xf32> to vector<16x32xf32>
    %148 = arith.subf %134, %147 : vector<16x32xf32>
    %149 = arith.mulf %148, %148 : vector<16x32xf32>
    %cst_49 = arith.constant dense<0.000000e+00> : vector<16xf32>
    %150 = vector.multi_reduction <add>, %149, %cst_49 [1] : vector<16x32xf32> to vector<16xf32>
    %151 = vector.shape_cast %150 : vector<16xf32> to vector<16x1xf32>
    %cst_50 = arith.constant 3.200000e+01 : f32
    %152 = vector.broadcast %cst_50 : f32 to vector<16x1xf32>
    %153 = arith.divf %151, %152 : vector<16x1xf32>
    %154 = vector.broadcast %146 : vector<16x1xf32> to vector<16x32xf32>
    %155 = arith.subf %134, %154 : vector<16x32xf32>
    %cst_51 = arith.constant 9.99999974E-6 : f32
    %156 = vector.broadcast %cst_51 : f32 to vector<16x1xf32>
    %157 = arith.addf %153, %156 : vector<16x1xf32>
    %158 = math.rsqrt %157 : vector<16x1xf32>
    %159 = vector.broadcast %158 : vector<16x1xf32> to vector<16x32xf32>
    %160 = arith.mulf %155, %159 : vector<16x32xf32>
    %161 = vector.broadcast %135 : vector<1x32xf32> to vector<16x32xf32>
    %162 = arith.mulf %160, %161 : vector<16x32xf32>
    %163 = vector.broadcast %136 : vector<1x32xf32> to vector<16x32xf32>
    %164 = arith.addf %162, %163 : vector<16x32xf32>
    %165 = arith.truncf %164 : vector<16x32xf32> to vector<16x32xbf16>
    %c224 = arith.constant 224 : index
    %c0_52 = arith.constant 0 : index
    %166 = vector.load %arg3[%c224, %c0_52] : memref<480x128xbf16, #tpu.memory_space<vmem>>, vector<32x128xbf16>
    %cst_53 = arith.constant dense<0.000000e+00> : vector<16x128xf32>
    %167 = tpu.matmul %165, %166, %cst_53 {dimension_numbers = #tpu.dot_dimension_numbers<[1], [0], [0], [1], [0, 0, 1, 1], [], []>} : vector<16x32xbf16>, vector<32x128xbf16>, vector<16x128xf32> -> vector<16x128xf32>
    %168 = vector.broadcast %137 : vector<1x128xf32> to vector<16x128xf32>
    %169 = arith.addf %167, %168 : vector<16x128xf32>
    %170 = vector.extract_strided_slice %169 {offsets = [0, 0], sizes = [16, 32], strides = [1, 1]} : vector<16x128xf32> to vector<16x32xf32>
    %cst_54 = arith.constant 2.500000e-01 : f32
    %171 = vector.broadcast %cst_54 : f32 to vector<16x32xf32>
    %172 = arith.mulf %170, %171 : vector<16x32xf32>
    %173 = vector.extract_strided_slice %169 {offsets = [0, 32], sizes = [16, 32], strides = [1, 1]} : vector<16x128xf32> to vector<16x32xf32>
    %174 = vector.extract_strided_slice %169 {offsets = [0, 64], sizes = [16, 32], strides = [1, 1]} : vector<16x128xf32> to vector<16x32xf32>
    %175 = vector.extract_strided_slice %172 {offsets = [0, 0], sizes = [16, 16], strides = [1, 1]} : vector<16x32xf32> to vector<16x16xf32>
    %176 = vector.extract_strided_slice %172 {offsets = [0, 16], sizes = [16, 16], strides = [1, 1]} : vector<16x32xf32> to vector<16x16xf32>
    %177 = vector.shape_cast %175 : vector<16x16xf32> to vector<1x16x16xf32>
    %178 = vector.shape_cast %176 : vector<16x16xf32> to vector<1x16x16xf32>
    %179 = tpu.concatenate %177, %178 in 0 : vector<1x16x16xf32>, vector<1x16x16xf32> -> vector<2x16x16xf32>
    %180 = arith.truncf %179 : vector<2x16x16xf32> to vector<2x16x16xbf16>
    %181 = vector.extract_strided_slice %173 {offsets = [0, 0], sizes = [16, 16], strides = [1, 1]} : vector<16x32xf32> to vector<16x16xf32>
    %182 = vector.extract_strided_slice %173 {offsets = [0, 16], sizes = [16, 16], strides = [1, 1]} : vector<16x32xf32> to vector<16x16xf32>
    %183 = vector.shape_cast %181 : vector<16x16xf32> to vector<1x16x16xf32>
    %184 = vector.shape_cast %182 : vector<16x16xf32> to vector<1x16x16xf32>
    %185 = tpu.concatenate %183, %184 in 0 : vector<1x16x16xf32>, vector<1x16x16xf32> -> vector<2x16x16xf32>
    %186 = arith.truncf %185 : vector<2x16x16xf32> to vector<2x16x16xbf16>
    %187 = vector.extract_strided_slice %174 {offsets = [0, 0], sizes = [16, 16], strides = [1, 1]} : vector<16x32xf32> to vector<16x16xf32>
    %188 = vector.extract_strided_slice %174 {offsets = [0, 16], sizes = [16, 16], strides = [1, 1]} : vector<16x32xf32> to vector<16x16xf32>
    %189 = vector.shape_cast %187 : vector<16x16xf32> to vector<1x16x16xf32>
    %190 = vector.shape_cast %188 : vector<16x16xf32> to vector<1x16x16xf32>
    %191 = tpu.concatenate %189, %190 in 0 : vector<1x16x16xf32>, vector<1x16x16xf32> -> vector<2x16x16xf32>
    %192 = arith.truncf %191 : vector<2x16x16xf32> to vector<2x16x16xbf16>
    "tpu.trace_start"() <{level = 10 : i32, message = "hqd,hkd->hqk"}> : () -> ()
    %cst_55 = arith.constant dense<0.000000e+00> : vector<2x16x16xf32>
    %193 = tpu.matmul %180, %186, %cst_55 {dimension_numbers = #tpu.dot_dimension_numbers<[2], [2], [1], [1], [0, 0, 0, 1, 1, 1], [0], [0]>} : vector<2x16x16xbf16>, vector<2x16x16xbf16>, vector<2x16x16xf32> -> vector<2x16x16xf32>
    "tpu.trace_stop"() : () -> ()
    %194 = vector.shape_cast %1 : vector<16x16xf32> to vector<1x16x16xf32>
    %195 = vector.broadcast %194 : vector<1x16x16xf32> to vector<2x16x16xf32>
    %196 = arith.addf %193, %195 : vector<2x16x16xf32>
    %cst_56 = arith.constant dense<0xFF800000> : vector<2x16xf32>
    %197 = vector.multi_reduction <maximumf>, %196, %cst_56 [2] : vector<2x16x16xf32> to vector<2x16xf32>
    %198 = vector.shape_cast %197 : vector<2x16xf32> to vector<2x16x1xf32>
    %199 = vector.broadcast %198 : vector<2x16x1xf32> to vector<2x16x16xf32>
    %200 = arith.subf %196, %199 : vector<2x16x16xf32>
    %201 = math.exp %200 : vector<2x16x16xf32>
    %cst_57 = arith.constant dense<0.000000e+00> : vector<2x16xf32>
    %202 = vector.multi_reduction <add>, %201, %cst_57 [2] : vector<2x16x16xf32> to vector<2x16xf32>
    %203 = vector.shape_cast %202 : vector<2x16xf32> to vector<2x16x1xf32>
    %204 = tpu.reciprocal %203 {approx = true} : vector<2x16x1xf32> -> vector<2x16x1xf32>
    %205 = vector.broadcast %204 : vector<2x16x1xf32> to vector<2x16x16xf32>
    %206 = arith.mulf %201, %205 : vector<2x16x16xf32>
    %207 = arith.truncf %206 : vector<2x16x16xf32> to vector<2x16x16xbf16>
    "tpu.trace_start"() <{level = 10 : i32, message = "hqk,hkd->hqd"}> : () -> ()
    %cst_58 = arith.constant dense<0.000000e+00> : vector<2x16x16xf32>
    %208 = tpu.matmul %207, %192, %cst_58 {dimension_numbers = #tpu.dot_dimension_numbers<[2], [1], [1], [2], [0, 0, 0, 1, 1, 2], [0], [0]>} : vector<2x16x16xbf16>, vector<2x16x16xbf16>, vector<2x16x16xf32> -> vector<2x16x16xf32>
    "tpu.trace_stop"() : () -> ()
    %209 = vector.extract_strided_slice %208 {offsets = [0, 0, 0], sizes = [1, 16, 16], strides = [1, 1, 1]} : vector<2x16x16xf32> to vector<1x16x16xf32>
    %210 = vector.shape_cast %209 : vector<1x16x16xf32> to vector<16x16xf32>
    %211 = vector.extract_strided_slice %208 {offsets = [1, 0, 0], sizes = [1, 16, 16], strides = [1, 1, 1]} : vector<2x16x16xf32> to vector<1x16x16xf32>
    %212 = vector.shape_cast %211 : vector<1x16x16xf32> to vector<16x16xf32>
    %213 = tpu.concatenate %210, %212 in 1 : vector<16x16xf32>, vector<16x16xf32> -> vector<16x32xf32>
    %214 = arith.truncf %213 : vector<16x32xf32> to vector<16x32xbf16>
    %c256 = arith.constant 256 : index
    %c0_59 = arith.constant 0 : index
    %215 = vector.load %arg3[%c256, %c0_59] : memref<480x128xbf16, #tpu.memory_space<vmem>>, vector<32x128xbf16>
    %cst_60 = arith.constant dense<0.000000e+00> : vector<16x128xf32>
    %216 = tpu.matmul %214, %215, %cst_60 {dimension_numbers = #tpu.dot_dimension_numbers<[1], [0], [0], [1], [0, 0, 1, 1], [], []>} : vector<16x32xbf16>, vector<32x128xbf16>, vector<16x128xf32> -> vector<16x128xf32>
    %217 = vector.broadcast %138 : vector<1x128xf32> to vector<16x128xf32>
    %218 = arith.addf %216, %217 : vector<16x128xf32>
    %219 = vector.extract_strided_slice %218 {offsets = [0, 0], sizes = [16, 32], strides = [1, 1]} : vector<16x128xf32> to vector<16x32xf32>
    %220 = arith.addf %134, %219 : vector<16x32xf32>
    %cst_61 = arith.constant dense<0.000000e+00> : vector<16xf32>
    %221 = vector.multi_reduction <add>, %220, %cst_61 [1] : vector<16x32xf32> to vector<16xf32>
    %222 = vector.shape_cast %221 : vector<16xf32> to vector<16x1xf32>
    %cst_62 = arith.constant 3.200000e+01 : f32
    %223 = vector.broadcast %cst_62 : f32 to vector<16x1xf32>
    %224 = arith.divf %222, %223 : vector<16x1xf32>
    %225 = vector.broadcast %224 : vector<16x1xf32> to vector<16x32xf32>
    %226 = arith.subf %220, %225 : vector<16x32xf32>
    %227 = arith.mulf %226, %226 : vector<16x32xf32>
    %cst_63 = arith.constant dense<0.000000e+00> : vector<16xf32>
    %228 = vector.multi_reduction <add>, %227, %cst_63 [1] : vector<16x32xf32> to vector<16xf32>
    %229 = vector.shape_cast %228 : vector<16xf32> to vector<16x1xf32>
    %cst_64 = arith.constant 3.200000e+01 : f32
    %230 = vector.broadcast %cst_64 : f32 to vector<16x1xf32>
    %231 = arith.divf %229, %230 : vector<16x1xf32>
    %232 = vector.broadcast %224 : vector<16x1xf32> to vector<16x32xf32>
    %233 = arith.subf %220, %232 : vector<16x32xf32>
    %cst_65 = arith.constant 9.99999974E-6 : f32
    %234 = vector.broadcast %cst_65 : f32 to vector<16x1xf32>
    %235 = arith.addf %231, %234 : vector<16x1xf32>
    %236 = math.rsqrt %235 : vector<16x1xf32>
    %237 = vector.broadcast %236 : vector<16x1xf32> to vector<16x32xf32>
    %238 = arith.mulf %233, %237 : vector<16x32xf32>
    %239 = vector.broadcast %139 : vector<1x32xf32> to vector<16x32xf32>
    %240 = arith.mulf %238, %239 : vector<16x32xf32>
    %241 = vector.broadcast %140 : vector<1x32xf32> to vector<16x32xf32>
    %242 = arith.addf %240, %241 : vector<16x32xf32>
    %243 = arith.truncf %242 : vector<16x32xf32> to vector<16x32xbf16>
    %c288 = arith.constant 288 : index
    %c0_66 = arith.constant 0 : index
    %244 = vector.load %arg3[%c288, %c0_66] : memref<480x128xbf16, #tpu.memory_space<vmem>>, vector<32x128xbf16>
    %cst_67 = arith.constant dense<0.000000e+00> : vector<16x128xf32>
    %245 = tpu.matmul %243, %244, %cst_67 {dimension_numbers = #tpu.dot_dimension_numbers<[1], [0], [0], [1], [0, 0, 1, 1], [], []>} : vector<16x32xbf16>, vector<32x128xbf16>, vector<16x128xf32> -> vector<16x128xf32>
    %246 = vector.broadcast %141 : vector<1x128xf32> to vector<16x128xf32>
    %247 = arith.addf %245, %246 : vector<16x128xf32>
    %cst_68 = arith.constant 5.000000e-01 : f32
    %248 = vector.broadcast %cst_68 : f32 to vector<16x128xf32>
    %249 = arith.mulf %248, %247 : vector<16x128xf32>
    %cst_69 = arith.constant 4.471500e-02 : f32
    %250 = vector.broadcast %cst_69 : f32 to vector<16x128xf32>
    %251 = arith.mulf %250, %247 : vector<16x128xf32>
    %252 = arith.mulf %251, %247 : vector<16x128xf32>
    %253 = arith.mulf %252, %247 : vector<16x128xf32>
    %254 = arith.addf %247, %253 : vector<16x128xf32>
    %cst_70 = arith.constant 0.797884583 : f32
    %255 = vector.broadcast %cst_70 : f32 to vector<16x128xf32>
    %256 = arith.mulf %255, %254 : vector<16x128xf32>
    %257 = math.tanh %256 : vector<16x128xf32>
    %cst_71 = arith.constant 1.000000e+00 : f32
    %258 = vector.broadcast %cst_71 : f32 to vector<16x128xf32>
    %259 = arith.addf %258, %257 : vector<16x128xf32>
    %260 = arith.mulf %249, %259 : vector<16x128xf32>
    %261 = arith.truncf %260 : vector<16x128xf32> to vector<16x128xbf16>
    %c320 = arith.constant 320 : index
    %c0_72 = arith.constant 0 : index
    %262 = vector.load %arg3[%c320, %c0_72] : memref<480x128xbf16, #tpu.memory_space<vmem>>, vector<128x128xbf16>
    %cst_73 = arith.constant dense<0.000000e+00> : vector<16x128xf32>
    %263 = tpu.matmul %261, %262, %cst_73 {dimension_numbers = #tpu.dot_dimension_numbers<[1], [0], [0], [1], [0, 0, 1, 1], [], []>} : vector<16x128xbf16>, vector<128x128xbf16>, vector<16x128xf32> -> vector<16x128xf32>
    %264 = vector.broadcast %142 : vector<1x128xf32> to vector<16x128xf32>
    %265 = arith.addf %263, %264 : vector<16x128xf32>
    %266 = vector.extract_strided_slice %265 {offsets = [0, 0], sizes = [16, 32], strides = [1, 1]} : vector<16x128xf32> to vector<16x32xf32>
    %267 = arith.addf %220, %266 : vector<16x32xf32>
    %c16 = arith.constant 16 : index
    %c0_74 = arith.constant 0 : index
    %268 = vector.load %arg2[%c16, %c0_74] : memref<24x128xf32, #tpu.memory_space<vmem>>, vector<1x32xf32>
    %c17 = arith.constant 17 : index
    %c0_75 = arith.constant 0 : index
    %269 = vector.load %arg2[%c17, %c0_75] : memref<24x128xf32, #tpu.memory_space<vmem>>, vector<1x32xf32>
    %cst_76 = arith.constant dense<0.000000e+00> : vector<16xf32>
    %270 = vector.multi_reduction <add>, %267, %cst_76 [1] : vector<16x32xf32> to vector<16xf32>
    %271 = vector.shape_cast %270 : vector<16xf32> to vector<16x1xf32>
    %cst_77 = arith.constant 3.200000e+01 : f32
    %272 = vector.broadcast %cst_77 : f32 to vector<16x1xf32>
    %273 = arith.divf %271, %272 : vector<16x1xf32>
    %274 = vector.broadcast %273 : vector<16x1xf32> to vector<16x32xf32>
    %275 = arith.subf %267, %274 : vector<16x32xf32>
    %276 = arith.mulf %275, %275 : vector<16x32xf32>
    %cst_78 = arith.constant dense<0.000000e+00> : vector<16xf32>
    %277 = vector.multi_reduction <add>, %276, %cst_78 [1] : vector<16x32xf32> to vector<16xf32>
    %278 = vector.shape_cast %277 : vector<16xf32> to vector<16x1xf32>
    %cst_79 = arith.constant 3.200000e+01 : f32
    %279 = vector.broadcast %cst_79 : f32 to vector<16x1xf32>
    %280 = arith.divf %278, %279 : vector<16x1xf32>
    %281 = vector.broadcast %273 : vector<16x1xf32> to vector<16x32xf32>
    %282 = arith.subf %267, %281 : vector<16x32xf32>
    %cst_80 = arith.constant 9.99999974E-6 : f32
    %283 = vector.broadcast %cst_80 : f32 to vector<16x1xf32>
    %284 = arith.addf %280, %283 : vector<16x1xf32>
    %285 = math.rsqrt %284 : vector<16x1xf32>
    %286 = vector.broadcast %285 : vector<16x1xf32> to vector<16x32xf32>
    %287 = arith.mulf %282, %286 : vector<16x32xf32>
    %288 = vector.broadcast %268 : vector<1x32xf32> to vector<16x32xf32>
    %289 = arith.mulf %287, %288 : vector<16x32xf32>
    %290 = vector.broadcast %269 : vector<1x32xf32> to vector<16x32xf32>
    %291 = arith.addf %289, %290 : vector<16x32xf32>
    %292 = arith.truncf %291 : vector<16x32xf32> to vector<16x32xbf16>
    %c448 = arith.constant 448 : index
    %c0_81 = arith.constant 0 : index
    %293 = vector.load %arg3[%c448, %c0_81] : memref<480x128xbf16, #tpu.memory_space<vmem>>, vector<32x128xbf16>
    %cst_82 = arith.constant dense<0.000000e+00> : vector<16x128xf32>
    %294 = tpu.matmul %292, %293, %cst_82 {dimension_numbers = #tpu.dot_dimension_numbers<[1], [0], [0], [1], [0, 0, 1, 1], [], []>} : vector<16x32xbf16>, vector<32x128xbf16>, vector<16x128xf32> -> vector<16x128xf32>
    %c0_83 = arith.constant 0 : index
    %c0_84 = arith.constant 0 : index
    %295 = vector.load %arg4[%c0_83, %c0_84] : memref<16x128xf32, #tpu.memory_space<vmem>>, vector<16x128xf32>
    tpu.vector_store %arg4[%c0_83, %c0_84], %294 {strides = array<i32>} : memref<16x128xf32, #tpu.memory_space<vmem>>, vector<16x128xf32>,
    return
  }
}

</mosaic_0001>

<bundles_post_ra>
// kernel: gpt_lm_forward.1
= control target key start
LH: loop header
LB: loop body
LE: loop exit
PB: predicated region body
PF: predicated region fallthrough
CT: control target
= control target key end

     0   :  { %vm30_vm0 = vcmask 261120   ;;  %v1886_v15 = vmov 0.0   ;;  %vm1887_vm1 = vmmov 0   ;;  %s1888_s28 = smov 112   ;;  %s1889_s29 = smov 96   ;;  %vm160_vm2 = vcmask 130048   ;;  %s2292_s0 = inlined_call_operand.vmem [shape: f32[16,32], index: 0, kind: input, shape index: {}]   ;;  %s2293_s3 = inlined_call_operand.vmem [shape: bf16[480,128], index: 3, kind: input, shape index: {}]   ;;  %s2294_s2 = inlined_call_operand.vmem [shape: f32[24,128], index: 2, kind: input, shape index: {}]   ;;  %s2295_s1 = inlined_call_operand.vmem [shape: f32[16,16], index: 1, kind: input, shape index: {}]   ;;  %s2296_s4 = inlined_call_operand.vmem [shape: f32[16,128], index: 4, kind: output, shape index: {}]  }
   0x1   :  { %v1920_v0 = vld [vmem:[%s2292_s0] sm:$0xff]  ;;  %v1925_v1 = vld [vmem:[%s2292_s0 + $0x8] sm:$0xff]  ;;  %1616 = vmatprep.subr.bf16.mxu1 %v1886_v15  ;;  %1630 = vmatprep.subr.bf16.mxu0 %v1886_v15  ;;  %s1891_s12 = smov 16  }
   0x2   :  { %v31_v2 = vsel %vm30_vm0, %v1920_v0, 0.0  ;;  %v34_v3 = vsel %vm30_vm0, %v1925_v1, 0.0  ;;  %v1796_v14 = vld [vmem:[%s2293_s3] sm:$0xff]   ;;  %v1797_v16 = vld [vmem:[%s2293_s3 + $0x8] sm:$0xff]   ;;  %1620 = vmatprep.mubr.msk.bf16.mxu1 %vm1887_vm1, %v1886_v15  ;;  %1632 = vmatprep.mubr.msk.bf16.mxu0 %vm1887_vm1, %v1886_v15 }
   0x3   :  { %32 = vadd.xlane.f32.xlu0 %v31_v2  ;;  %1617 = vmatpush3.bf16.msra.mxu1 %v1796_v14  ;;  %v1498_v25 = vld [vmem:[%s2294_s2] ss:$0 sm:$0xff]  ;;  %v1499_v29 = vld [vmem:[%s2294_s2 + $0x1] ss:$0 sm:$0xff]  ;;  %v1500_v34 = vld [vmem:[%s2294_s2 + $0x2] ss:$0 sm:$0xff] }
   0x4   :  { %1618 = vmatprep.subr.bf16.mxu1 %v1886_v15  ;;  %v1984_v59 = vld [vmem:[%s2295_s1] sm:$0xff]  ;;  %v1989_v61 = vld [vmem:[%s2295_s1 + $0x8] sm:$0xff]  ;;  %s1890_s1 = smov 64  }
   0x7   :  { %35 = vadd.xlane.f32.xlu0 %v34_v3  ;;  %1619 = vmatpush3.bf16.msra.mxu1 %v1797_v16 }
   0x8   :  { %1624 = vmatprep.subr.bf16.mxu1 %v1886_v15 }
  0x90   :  { %v33_v4 = vpop.xlane.xlu0 %32 }
  0x91   :  { %v38_v5 = vmul.f32 0.03125, %v33_v4 }
  0x93   :  { %v40_v6 = vsub.f32 %v1920_v0, %v38_v5 }
  0x94   :  { %v36_v7 = vpop.xlane.xlu0 %35 }
  0x95   :  { %v39_v8 = vmul.f32 0.03125, %v36_v7  ;;  %v42_v9 = vmul.f32 %v40_v6, %v40_v6 }
  0x97   :  { %v41_v10 = vsub.f32 %v1925_v1, %v39_v8  ;;  %v44_v11 = vsel %vm30_vm0, %v42_v9, 0.0 }
  0x98   :  { %45 = vadd.xlane.f32.xlu1 %v44_v11 }
  0x99   :  { %v43_v12 = vmul.f32 %v41_v10, %v41_v10 }
  0x9b   :  { %v47_v13 = vsel %vm30_vm0, %v43_v12, 0.0 }
  0x9c   :  { %48 = vadd.xlane.f32.xlu1 %v47_v13 }
 0x125   :  { %v46_v17 = vpop.xlane.xlu1 %45 }
 0x126   :  { %v50_v18 = vmul.f32 0.03125, %v46_v17 }
 0x128   :  { %v52_v19 = vadd.f32 1e-05, %v50_v18 }
 0x129   :  { %v49_v20 = vpop.xlane.xlu1 %48 }
 0x12a   :  { %1826 = vrsqrt.f32 %v52_v19  ;;  %v51_v21 = vmul.f32 0.03125, %v49_v20 }
 0x12c   :  { %v53_v22 = vadd.f32 1e-05, %v51_v21 }
 0x12e   :  { %1828 = vrsqrt.f32 %v53_v22 }
 0x134   :  { %v1827_v23 = vpop.eup %1826 }
 0x135   :  { %v56_v24 = vmul.f32 %v1827_v23, %v40_v6 }
 0x137   :  { %v62_v28 = vmul.f32 %v1498_v25, %v56_v24 }
 0x138   :  { %v1829_v26 = vpop.eup %1828 }
 0x139   :  { %v57_v27 = vmul.f32 %v1829_v26, %v41_v10  ;;  %v68_v31 = vadd.f32 %v1499_v29, %v62_v28 }
 0x13b   :  { %v63_v30 = vmul.f32 %v1498_v25, %v57_v27 }
 0x13d   :  { %v69_v32 = vadd.f32 %v1499_v29, %v63_v30 }
 0x13f   :  { %v70_v33 = vpack.c.bf16 %v69_v32, %v68_v31 }
 0x141   :  { %1621 = vmatmul.mubr.msk.bf16.vlgmr.msra.gmra.mrb[0].mxu1 %vm30_vm0, %v70_v33 }
 0x142   :  { %1626 = vmatprep.mubr.msk.bf16.mxu1 %vm1887_vm1, %v1886_v15 }
 0x214   :  { %v128_v35 = vpop.f32.mrb[0].mxu1 }
 0x215   :  { %v129_v36 = vadd.f32 %v1500_v34, %v128_v35  ;;  %v1622_v37 = vpop.f32.mrb[1].mxu1 }
 0x216   :  { %v131_v38 = vpop.f32.mrb[2].mxu1 }
 0x217   :  { %v132_v39 = vadd.f32 %v1500_v34, %v131_v38  ;;  %v1623_v40 = vpop.f32.mrb[3].mxu1  ;;  %v135_v41 = vmul.f32 0.25, %v129_v36 }
 0x219   :  { %v136_v42 = vmul.f32 0.25, %v132_v39  ;;  %v1766_v43 = vpack.i.bf16 %v132_v39, %v129_v36  ;;  %v1961_v44 = vpack.c.bf16 %v132_v39, %v129_v36 }
 0x21b   :  { %v145_v45 = vpack.c.bf16 %v136_v42, %v135_v41  ;;  %1767 = vrot.lane.b32.xlu0 %v1766_v43, %s1888_s28  ;;  %v1771_v46 = vpack.i.bf16 %v136_v42, %v135_v41 }
 0x28d   :  { %v1768_v47 = vpop.permute.xlu0 %1767 }
 0x28e   :  { %v1770_v48 = vunpack.i.h.bf16 %v1768_v47  ;;  %v1769_v49 = vunpack.i.l.bf16 %v1768_v47 }
 0x290   :  { %v1964_v50 = vpack.c.bf16 %v1770_v48, %v1769_v49 }
 0x292   :  { %209 = vrot.lane.b32.xlu1 %v1964_v50, %s1889_s29 }
 0x296   :  { %1772 = vrot.lane.b32.xlu1 %v1771_v46, %s1888_s28 }
 0x29a   :  { %158 = vrot.lane.b32.xlu1 %v1961_v44, %s1889_s29 }
 0x304   :  { %v210_v51 = vpop.permute.xlu1 %209 }
 0x305   :  { %v215_v52 = vsel %vm160_vm2, %v210_v51, 0 }
 0x306   :  { %1631 = vmatpush3.bf16.xpose.msra.mxu0 %v215_v52  ;;  %v1798_v52 = vld [vmem:[%s2293_s3 + $0x10] sm:$0xff]  }
 0x307   :  { %1642 = vmatprep.subr.bf16.mxu0 %v1886_v15 }
 0x308   :  { %v1773_v53 = vpop.permute.xlu1 %1772 }
 0x309   :  { %v1775_v54 = vunpack.i.h.bf16 %v1773_v53  ;;  %v1774_v55 = vunpack.i.l.bf16 %v1773_v53  ;;  %v1799_v53 = vld [vmem:[%s2293_s3 + $0x18] sm:$0xff]  }
 0x30b   :  { %v146_v56 = vpack.c.bf16 %v1775_v54, %v1774_v55 }
 0x30c   :  { %v159_v57 = vpop.permute.xlu1 %158 }
 0x30d   :  { %v165_v58 = vsel %vm160_vm2, %v159_v57, 0  ;;  %1633 = vmatmul.mubr.msk.bf16.vlgmr.msra.gmra.mrb[0].mxu0 %vm160_vm2, %v146_v56 }
 0x30e   :  { %1625 = vmatpush3.bf16.xpose.msra.mxu1 %v165_v58  ;;  %1644 = vmatprep.mubr.msk.bf16.mxu0 %vm1887_vm1, %v1886_v15 }
 0x30f   :  { %1636 = vmatprep.subr.bf16.mxu1 %v1886_v15 }
 0x315   :  { %1627 = vmatmul.mubr.msk.bf16.vlgmr.msra.gmra.mrb[4].mxu1 %vm160_vm2, %v145_v45 }
 0x316   :  { %1638 = vmatprep.mubr.msk.bf16.mxu1 %vm1887_vm1, %v1886_v15 }
 0x3e0   :  { %v251_v60 = vpop.f32.mrb[0].mxu0 }
 0x3e1   :  { %v252_v62 = vadd.f32 %v251_v60, %v1984_v59  ;;  %v1634_v63 = vpop.f32.mrb[1].mxu0 }
 0x3e2   :  { %v254_v2 = vpop.f32.mrb[2].mxu0 }
 0x3e3   :  { %v255_v3 = vadd.f32 %v254_v2, %v1989_v61  ;;  %v1635_v4 = vpop.f32.mrb[3].mxu0  ;;  %v264_v5 = vsel %vm160_vm2, %v252_v62, -inf }
 0x3e4   :  { %265 = vmax.xlane.f32.xlu0 %v264_v5 }
 0x3e5   :  { %v267_v6 = vsel %vm160_vm2, %v255_v3, -inf }
 0x3e6   :  { %268 = vmax.xlane.f32.xlu1 %v267_v6 }
 0x3e8   :  { %v201_v7 = vpop.f32.mrb[4].mxu1 }
 0x3e9   :  { %v202_v8 = vadd.f32 %v201_v7, %v1984_v59  ;;  %v1628_v9 = vpop.f32.mrb[5].mxu1 }
 0x3ea   :  { %v204_v10 = vpop.f32.mrb[6].mxu1  ;;  %v1508_v9 = vld [vmem:[%s2294_s2 + $0x3] ss:$0 sm:$0xff] }
 0x3eb   :  { %v205_v11 = vadd.f32 %v204_v10, %v1989_v61  ;;  %v1629_v12 = vpop.f32.mrb[7].mxu1  ;;  %v258_v13 = vsel %vm160_vm2, %v202_v8, -inf }
 0x3ec   :  { %259 = vmax.xlane.f32.xlu0 %v258_v13 }
 0x3ed   :  { %v261_v14 = vsel %vm160_vm2, %v205_v11, -inf }
 0x3f0   :  { %262 = vmax.xlane.f32.xlu0 %v261_v14 }
 0x471   :  { %v266_v16 = vpop.xlane.xlu0 %265 }
 0x472   :  { %v272_v17 = vsub.f32 %v252_v62, %v266_v16 }
 0x473   :  { %v269_v18 = vpop.xlane.xlu1 %268 }
 0x474   :  { %v278_v19 = vmul.f32 1.442695, %v272_v17  ;;  %v273_v20 = vsub.f32 %v255_v3, %v269_v18 }
 0x476   :  { %1830 = vpow2.f32 %v278_v19  ;;  %v280_v21 = vmul.f32 1.442695, %v273_v20 }
 0x478   :  { %1832 = vpow2.f32 %v280_v21 }
 0x479   :  { %v260_v22 = vpop.xlane.xlu0 %259 }
 0x47a   :  { %v270_v23 = vsub.f32 %v202_v8, %v260_v22 }
 0x47c   :  { %v274_v24 = vmul.f32 1.442695, %v270_v23 }
 0x47d   :  { %v263_v25 = vpop.xlane.xlu0 %262 }
 0x47e   :  { %1834 = vpow2.f32 %v274_v24  ;;  %v271_v26 = vsub.f32 %v205_v11, %v263_v25 }
 0x480   :  { %v1831_v27 = vpop.eup %1830  ;;  %v276_v28 = vmul.f32 1.442695, %v271_v26 }
 0x481   :  { %v288_v29 = vsel %vm160_vm2, %v1831_v27, 0.0 }
 0x482   :  { %v1833_v30 = vpop.eup %1832  ;;  %1836 = vpow2.f32 %v276_v28  ;;  %289 = vadd.xlane.f32.xlu0 %v288_v29  ;;  %v1800_v29 = vld [vmem:[%s2293_s3 + $0x20] sm:$0xff]  }
 0x483   :  { %v291_v31 = vsel %vm160_vm2, %v1833_v30, 0.0 }
 0x484   :  { %292 = vadd.xlane.f32.xlu1 %v291_v31 }
 0x488   :  { %v1835_v32 = vpop.eup %1834 }
 0x489   :  { %v282_v33 = vsel %vm160_vm2, %v1835_v32, 0.0 }
 0x48a   :  { %283 = vadd.xlane.f32.xlu1 %v282_v33 }
 0x48c   :  { %v1837_v34 = vpop.eup %1836 }
 0x48d   :  { %v285_v35 = vsel %vm160_vm2, %v1837_v34, 0.0 }
 0x48e   :  { %286 = vadd.xlane.f32.xlu1 %v285_v35 }
 0x498   :  { %351 = vrot.lane.b32.xlu0 %v1964_v50, %s1890_s1 }
 0x49f   :  { %304 = vrot.lane.b32.xlu1 %v1961_v44, %s1890_s1 }
 0x50f   :  { %v290_v36 = vpop.xlane.xlu0 %289 }
 0x510   :  { %1838 = vrcp.f32 %v290_v36 }
 0x511   :  { %v293_v37 = vpop.xlane.xlu1 %292 }
 0x512   :  { %1840 = vrcp.f32 %v293_v37 }
 0x513   :  { %v352_v38 = vpop.permute.xlu0 %351 }
 0x514   :  { %1643 = vmatpush3.bf16.msra.mxu0 %v352_v38 }
 0x515   :  { %1656 = vmatprep.subr.bf16.mxu0 %v1886_v15 }
 0x517   :  { %v284_v39 = vpop.xlane.xlu1 %283 }
 0x518   :  { %1842 = vrcp.f32 %v284_v39  ;;  %v1512_v39 = vld [vmem:[%s2294_s2 + $0x4] ss:$0 sm:$0xff] }
 0x51a   :  { %v1839_v40 = vpop.eup %1838 }
 0x51b   :  { %v287_v41 = vpop.xlane.xlu1 %286  ;;  %v300_v43 = vmul.f32 %v1839_v40, %v1831_v27 }
 0x51c   :  { %v1841_v42 = vpop.eup %1840  ;;  %1844 = vrcp.f32 %v287_v41 }
 0x51d   :  { %v301_v45 = vmul.f32 %v1841_v42, %v1833_v30  ;;  %v1801_v30 = vld [vmem:[%s2293_s3 + $0x28] sm:$0xff]  }
 0x51f   :  { %v305_v46 = vpop.permute.xlu1 %304  ;;  %v303_v47 = vpack.c.bf16 %v301_v45, %v300_v43  ;;  %v1513_v43 = vld [vmem:[%s2294_s2 + $0x5] ss:$0 sm:$0xff] }
 0x520   :  { %1637 = vmatpush3.bf16.msra.mxu1 %v305_v46 }
 0x521   :  { %1645 = vmatmul.mubr.msk.bf16.vlgmr.msra.gmra.mrb[4].mxu0 %vm160_vm2, %v303_v47  ;;  %1648 = vmatprep.subr.bf16.mxu1 %v1886_v15 }
 0x522   :  { %1660 = vmatprep.mubr.msk.bf16.mxu0 %vm1887_vm1, %v1886_v15  ;;  %v1843_v44 = vpop.eup %1842  ;;  %1657 = vmatpush3.bf16.msra.mxu0 %v1800_v29 }
 0x523   :  { %v298_v49 = vmul.f32 %v1843_v44, %v1835_v32  ;;  %1658 = vmatprep.subr.bf16.mxu0 %v1886_v15 }
 0x526   :  { %v1845_v48 = vpop.eup %1844  ;;  %1659 = vmatpush3.bf16.msra.mxu0 %v1801_v30 }
 0x527   :  { %v299_v50 = vmul.f32 %v1845_v48, %v1837_v34  ;;  %1684 = vmatprep.subr.bf16.mxu0 %v1886_v15  ;;  %v1802_v48 = vld [vmem:[%s2293_s3 + $0x30] sm:$0xff]  }
 0x529   :  { %v302_v51 = vpack.c.bf16 %v299_v50, %v298_v49  ;;  %v1803_v49 = vld [vmem:[%s2293_s3 + $0x38] sm:$0xff]   ;;  %v1804_v50 = vld [vmem:[%s2293_s3 + $0x40] sm:$0xff]  }
 0x52b   :  { %1639 = vmatmul.mubr.msk.bf16.vlgmr.msra.gmra.mrb[8].mxu1 %vm160_vm2, %v302_v51  ;;  %v1805_v51 = vld [vmem:[%s2293_s3 + $0x48] sm:$0xff]  }
 0x52c   :  { %1652 = vmatprep.mubr.msk.bf16.mxu1 %vm1887_vm1, %v1886_v15  ;;  %1649 = vmatpush3.bf16.msra.mxu1 %v1798_v52  ;;  %v1806_v52 = vld [vmem:[%s2293_s3 + $0x50] sm:$0xff]  }
 0x52d   :  { %1650 = vmatprep.subr.bf16.mxu1 %v1886_v15 }
 0x530   :  { %1651 = vmatpush3.bf16.msra.mxu1 %v1799_v53  ;;  %v1807_v53 = vld [vmem:[%s2293_s3 + $0x58] sm:$0xff]  }
 0x531   :  { %1664 = vmatprep.subr.bf16.mxu1 %v1886_v15 }
 0x5f4   :  { %v391_v54 = vpop.f32.mrb[4].mxu0 }
 0x5f5   :  { %v1646_v55 = vpop.f32.mrb[5].mxu0 }
 0x5f6   :  { %v394_v56 = vpop.f32.mrb[6].mxu0  ;;  %v1809_v55 = vld [vmem:[%s2293_s3 + $0x68] sm:$0xff]  }
 0x5f7   :  { %v1776_v57 = vpack.i.bf16 %v394_v56, %v391_v54  ;;  %v1647_v58 = vpop.f32.mrb[7].mxu0  ;;  %v1808_v54 = vld [vmem:[%s2293_s3 + $0x60] sm:$0xff]  }
 0x5f8   :  { %v1514_v56 = vld [vmem:[%s2294_s2 + $0x6] ss:$0 sm:$0xff] }
 0x5f9   :  { %1777 = vrot.lane.b32.xlu0 %v1776_v57, %s1891_s12 }
 0x5fe   :  { %v344_v60 = vpop.f32.mrb[8].mxu1 }
 0x5ff   :  { %v1640_v62 = vpop.f32.mrb[9].mxu1 }
 0x600   :  { %v347_v63 = vpop.f32.mrb[10].mxu1 }
 0x601   :  { %v1641_v2 = vpop.f32.mrb[11].mxu1 }
 0x66b   :  { %v1778_v3 = vpop.permute.xlu0 %1777 }
 0x66c   :  { %v1780_v4 = vunpack.i.h.bf16 %v1778_v3  ;;  %v1779_v5 = vunpack.i.l.bf16 %v1778_v3 }
 0x66e   :  { %v406_v6 = vsel %vm160_vm2, %v344_v60, %v1779_v5  ;;  %v407_v7 = vsel %vm160_vm2, %v347_v63, %v1780_v4 }
 0x66f   :  { %v408_v8 = vpack.c.bf16 %v407_v7, %v406_v6 }
 0x671   :  { %1653 = vmatmul.mubr.msk.bf16.vlgmr.msra.gmra.mrb[12].mxu1 %vm30_vm0, %v408_v8 }
 0x672   :  { %1680 = vmatprep.mubr.msk.bf16.mxu1 %vm1887_vm1, %v1886_v15  ;;  %1665 = vmatpush3.bf16.msra.mxu1 %v1802_v48 }
 0x673   :  { %1666 = vmatprep.subr.bf16.mxu1 %v1886_v15 }
 0x676   :  { %1667 = vmatpush3.bf16.msra.mxu1 %v1803_v49 }
 0x677   :  { %1668 = vmatprep.subr.bf16.mxu1 %v1886_v15 }
 0x67a   :  { %1669 = vmatpush3.bf16.msra.mxu1 %v1804_v50 }
 0x67b   :  { %1670 = vmatprep.subr.bf16.mxu1 %v1886_v15 }
 0x67e   :  { %1671 = vmatpush3.bf16.msra.mxu1 %v1805_v51  ;;  %v1527_v51 = vld [vmem:[%s2294_s2 + $0x8] ss:$0 sm:$0xff] }
 0x67f   :  { %1672 = vmatprep.subr.bf16.mxu1 %v1886_v15 }
 0x682   :  { %1673 = vmatpush3.bf16.msra.mxu1 %v1806_v52 }
 0x683   :  { %1674 = vmatprep.subr.bf16.mxu1 %v1886_v15 }
 0x686   :  { %1675 = vmatpush3.bf16.msra.mxu1 %v1807_v53 }
 0x687   :  { %1676 = vmatprep.subr.bf16.mxu1 %v1886_v15 }
 0x68a   :  { %1677 = vmatpush3.bf16.msra.mxu1 %v1808_v54 }
 0x68b   :  { %1678 = vmatprep.subr.bf16.mxu1 %v1886_v15 }
 0x68e   :  { %1679 = vmatpush3.bf16.msra.mxu1 %v1809_v55 }
 0x68f   :  { %1710 = vmatprep.subr.bf16.mxu1 %v1886_v15 }
 0x744   :  { %v466_v10 = vpop.f32.mrb[12].mxu1 }
 0x745   :  { %v467_v11 = vadd.f32 %v1508_v9, %v466_v10  ;;  %v1654_v12 = vpop.f32.mrb[13].mxu1 }
 0x746   :  { %v469_v13 = vpop.f32.mrb[14].mxu1 }
 0x747   :  { %v2033_v14 = vadd.f32 %v467_v11, %v1920_v0  ;;  %v470_v16 = vadd.f32 %v1508_v9, %v469_v13  ;;  %v1655_v17 = vpop.f32.mrb[15].mxu1 }
 0x749   :  { %v2036_v18 = vadd.f32 %v470_v16, %v1925_v1  ;;  %v475_v19 = vsel %vm30_vm0, %v2033_v14, 0.0 }
 0x74a   :  { %476 = vadd.xlane.f32.xlu1 %v475_v19 }
 0x74b   :  { %v478_v20 = vsel %vm30_vm0, %v2036_v18, 0.0 }
 0x74c   :  { %479 = vadd.xlane.f32.xlu0 %v478_v20 }
 0x7d7   :  { %v477_v21 = vpop.xlane.xlu1 %476 }
 0x7d8   :  { %v481_v22 = vmul.f32 0.03125, %v477_v21 }
 0x7d9   :  { %v480_v23 = vpop.xlane.xlu0 %479 }
 0x7da   :  { %v483_v24 = vsub.f32 %v2033_v14, %v481_v22  ;;  %v482_v0 = vmul.f32 0.03125, %v480_v23 }
 0x7dc   :  { %v484_v25 = vsub.f32 %v2036_v18, %v482_v0  ;;  %v485_v26 = vmul.f32 %v483_v24, %v483_v24  ;;  %v1518_v0 = vld [vmem:[%s2294_s2 + $0x7] ss:$0 sm:$0xff] }
 0x7de   :  { %v487_v1 = vsel %vm30_vm0, %v485_v26, 0.0  ;;  %v486_v27 = vmul.f32 %v484_v25, %v484_v25 }
 0x7df   :  { %488 = vadd.xlane.f32.xlu0 %v487_v1 }
 0x7e0   :  { %v490_v28 = vsel %vm30_vm0, %v486_v27, 0.0 }
 0x7e3   :  { %491 = vadd.xlane.f32.xlu0 %v490_v28 }
 0x86c   :  { %v489_v31 = vpop.xlane.xlu0 %488 }
 0x86d   :  { %v493_v32 = vmul.f32 0.03125, %v489_v31 }
 0x86f   :  { %v495_v33 = vadd.f32 1e-05, %v493_v32 }
 0x870   :  { %v492_v34 = vpop.xlane.xlu0 %491 }
 0x871   :  { %1846 = vrsqrt.f32 %v495_v33  ;;  %v494_v35 = vmul.f32 0.03125, %v492_v34 }
 0x873   :  { %v496_v36 = vadd.f32 1e-05, %v494_v35 }
 0x875   :  { %1848 = vrsqrt.f32 %v496_v36 }
 0x87b   :  { %v1847_v37 = vpop.eup %1846 }
 0x87c   :  { %v499_v38 = vmul.f32 %v1847_v37, %v483_v24 }
 0x87e   :  { %v505_v41 = vmul.f32 %v1512_v39, %v499_v38 }
 0x87f   :  { %v1849_v40 = vpop.eup %1848 }
 0x880   :  { %v500_v42 = vmul.f32 %v1849_v40, %v484_v25  ;;  %v511_v46 = vadd.f32 %v1513_v43, %v505_v41 }
 0x882   :  { %v506_v45 = vmul.f32 %v1512_v39, %v500_v42  ;;  %v1810_v42 = vld [vmem:[%s2293_s3 + $0x70] sm:$0xff]  }
 0x884   :  { %v512_v47 = vadd.f32 %v1513_v43, %v506_v45  ;;  %v1811_v43 = vld [vmem:[%s2293_s3 + $0x78] sm:$0xff]  }
 0x886   :  { %v513_v44 = vpack.c.bf16 %v512_v47, %v511_v46 }
 0x888   :  { %1661 = vmatmul.mubr.msk.bf16.vlgmr.msra.gmra.mrb[8].mxu0 %vm30_vm0, %v513_v44 }
 0x889   :  { %1688 = vmatprep.mubr.msk.bf16.mxu0 %vm1887_vm1, %v1886_v15  ;;  %1685 = vmatpush3.bf16.msra.mxu0 %v1810_v42 }
 0x88a   :  { %1686 = vmatprep.subr.bf16.mxu0 %v1886_v15 }
 0x88d   :  { %1687 = vmatpush3.bf16.msra.mxu0 %v1811_v43 }
 0x88e   :  { %1692 = vmatprep.subr.bf16.mxu0 %v1886_v15 }
 0x95b   :  { %v571_v57 = vpop.f32.mrb[8].mxu0 }
 0x95c   :  { %v572_v58 = vadd.f32 %v1514_v56, %v571_v57  ;;  %v1662_v60 = vpop.f32.mrb[9].mxu0 }
 0x95d   :  { %v574_v62 = vpop.f32.mrb[10].mxu0 }
 0x95e   :  { %v580_v63 = vmul.f32 0.044715, %v572_v58  ;;  %v575_v2 = vadd.f32 %v1514_v56, %v574_v62  ;;  %v1663_v3 = vpop.f32.mrb[11].mxu0  ;;  %v578_v19 = vmul.f32 0.5, %v572_v58  ;;  %v1528_v56 = vld [vmem:[%s2294_s2 + $0x9] ss:$0 sm:$0xff] }
 0x960   :  { %v582_v4 = vmul.f32 %v580_v63, %v572_v58  ;;  %v581_v5 = vmul.f32 0.044715, %v575_v2  ;;  %v579_v20 = vmul.f32 0.5, %v575_v2  ;;  %v1529_v63 = vld [vmem:[%s2294_s2 + $0xa] ss:$0 sm:$0xff] }
 0x962   :  { %v584_v6 = vmul.f32 %v582_v4, %v572_v58  ;;  %v583_v7 = vmul.f32 %v581_v5, %v575_v2 }
 0x964   :  { %v586_v8 = vadd.f32 %v584_v6, %v572_v58  ;;  %v585_v9 = vmul.f32 %v583_v7, %v575_v2 }
 0x966   :  { %v588_v10 = vmul.f32 0.7978846, %v586_v8  ;;  %v587_v11 = vadd.f32 %v585_v9, %v575_v2 }
 0x968   :  { %1850 = vtanh.f32 %v588_v10  ;;  %v589_v12 = vmul.f32 0.7978846, %v587_v11 }
 0x96a   :  { %1852 = vtanh.f32 %v589_v12 }
 0x972   :  { %v1851_v13 = vpop.eup %1850 }
 0x973   :  { %v592_v16 = vadd.f32 1.0, %v1851_v13 }
 0x974   :  { %v1853_v17 = vpop.eup %1852 }
 0x975   :  { %v593_v21 = vadd.f32 1.0, %v1853_v17  ;;  %v594_v22 = vmul.f32 %v592_v16, %v578_v19 }
 0x977   :  { %v595_v23 = vmul.f32 %v593_v21, %v579_v20 }
 0x979   :  { %v596_v24 = vpack.c.bf16 %v595_v23, %v594_v22 }
 0x97b   :  { %1681 = vmatmul.mubr.bf16.vlgmr.msra.gmra.mrb[16].mxu1 %v596_v24 }
 0x97c   :  { %1712 = vmatprep.mubr.msk.bf16.mxu1 %vm1887_vm1, %v1886_v15 }
 0xa4e   :  { %v699_v25 = vpop.f32.mrb[16].mxu1 }
 0xa4f   :  { %v700_v26 = vadd.f32 %v1518_v0, %v699_v25  ;;  %v1682_v1 = vpop.f32.mrb[17].mxu1 }
 0xa50   :  { %v702_v27 = vpop.f32.mrb[18].mxu1 }
 0xa51   :  { %v2104_v28 = vadd.f32 %v700_v26, %v2033_v14  ;;  %v703_v29 = vadd.f32 %v1518_v0, %v702_v27  ;;  %v1683_v30 = vpop.f32.mrb[19].mxu1 }
 0xa53   :  { %v2107_v31 = vadd.f32 %v703_v29, %v2036_v18  ;;  %v716_v32 = vsel %vm30_vm0, %v2104_v28, 0.0 }
 0xa54   :  { %717 = vadd.xlane.f32.xlu1 %v716_v32 }
 0xa55   :  { %v719_v33 = vsel %vm30_vm0, %v2107_v31, 0.0 }
 0xa56   :  { %720 = vadd.xlane.f32.xlu0 %v719_v33 }
 0xae1   :  { %v718_v34 = vpop.xlane.xlu1 %717 }
 0xae2   :  { %v722_v35 = vmul.f32 0.03125, %v718_v34 }
 0xae3   :  { %v721_v36 = vpop.xlane.xlu0 %720 }
 0xae4   :  { %v724_v37 = vsub.f32 %v2104_v28, %v722_v35  ;;  %v723_v14 = vmul.f32 0.03125, %v721_v36 }
 0xae6   :  { %v725_v38 = vsub.f32 %v2107_v31, %v723_v14  ;;  %v726_v39 = vmul.f32 %v724_v37, %v724_v37 }
 0xae8   :  { %v728_v18 = vsel %vm30_vm0, %v726_v39, 0.0  ;;  %v727_v40 = vmul.f32 %v725_v38, %v725_v38 }
 0xae9   :  { %729 = vadd.xlane.f32.xlu1 %v728_v18 }
 0xaea   :  { %v731_v41 = vsel %vm30_vm0, %v727_v40, 0.0 }
 0xaeb   :  { %732 = vadd.xlane.f32.xlu0 %v731_v41 }
 0xb76   :  { %v730_v45 = vpop.xlane.xlu1 %729 }
 0xb77   :  { %v734_v46 = vmul.f32 0.03125, %v730_v45 }
 0xb78   :  { %v733_v47 = vpop.xlane.xlu0 %732 }
 0xb79   :  { %v736_v44 = vadd.f32 1e-05, %v734_v46  ;;  %v735_v48 = vmul.f32 0.03125, %v733_v47 }
 0xb7b   :  { %1854 = vrsqrt.f32 %v736_v44  ;;  %v737_v49 = vadd.f32 1e-05, %v735_v48 }
 0xb7d   :  { %1856 = vrsqrt.f32 %v737_v49 }
 0xb85   :  { %v1855_v50 = vpop.eup %1854 }
 0xb86   :  { %v740_v52 = vmul.f32 %v1855_v50, %v724_v37 }
 0xb87   :  { %v1857_v53 = vpop.eup %1856 }
 0xb88   :  { %v746_v54 = vmul.f32 %v1527_v51, %v740_v52  ;;  %v741_v55 = vmul.f32 %v1857_v53, %v725_v38 }
 0xb8a   :  { %v747_v57 = vmul.f32 %v1527_v51, %v741_v55  ;;  %v752_v58 = vadd.f32 %v1528_v56, %v746_v54 }
 0xb8c   :  { %v753_v60 = vadd.f32 %v1528_v56, %v747_v57 }
 0xb8e   :  { %v754_v62 = vpack.c.bf16 %v753_v60, %v752_v58 }
 0xb90   :  { %1689 = vmatmul.mubr.msk.bf16.vlgmr.msra.gmra.mrb[12].mxu0 %vm30_vm0, %v754_v62 }
 0xb91   :  { %1694 = vmatprep.mubr.msk.bf16.mxu0 %vm1887_vm1, %v1886_v15 }
 0xc63   :  { %v812_v2 = vpop.f32.mrb[12].mxu0 }
 0xc64   :  { %v813_v3 = vadd.f32 %v1529_v63, %v812_v2  ;;  %v1690_v4 = vpop.f32.mrb[13].mxu0 }
 0xc65   :  { %v815_v5 = vpop.f32.mrb[14].mxu0 }
 0xc66   :  { %v816_v6 = vadd.f32 %v1529_v63, %v815_v5  ;;  %v1691_v7 = vpop.f32.mrb[15].mxu0  ;;  %v819_v8 = vmul.f32 0.25, %v813_v3 }
 0xc68   :  { %v820_v9 = vmul.f32 0.25, %v816_v6  ;;  %v1781_v10 = vpack.i.bf16 %v816_v6, %v813_v3  ;;  %v2137_v11 = vpack.c.bf16 %v816_v6, %v813_v3 }
 0xc6a   :  { %v829_v12 = vpack.c.bf16 %v820_v9, %v819_v8  ;;  %1782 = vrot.lane.b32.xlu1 %v1781_v10, %s1888_s28  ;;  %842 = vrot.lane.b32.xlu0 %v2137_v11, %s1889_s29  ;;  %v1786_v13 = vpack.i.bf16 %v820_v9, %v819_v8 }
 0xcdc   :  { %v1783_v16 = vpop.permute.xlu1 %1782  ;;  %v843_v17 = vpop.permute.xlu0 %842 }
 0xcdd   :  { %v1785_v19 = vunpack.i.h.bf16 %v1783_v16  ;;  %v1784_v20 = vunpack.i.l.bf16 %v1783_v16  ;;  %v848_v21 = vsel %vm160_vm2, %v843_v17, 0 }
 0xcde   :  { %1693 = vmatpush3.bf16.xpose.msra.mxu0 %v848_v21  ;;  %v1813_v21 = vld [vmem:[%s2293_s3 + $0x88] sm:$0xff]  }
 0xcdf   :  { %v2143_v22 = vpack.c.bf16 %v1785_v19, %v1784_v20  ;;  %1698 = vmatprep.subr.bf16.mxu0 %v1886_v15  ;;  %v1812_v20 = vld [vmem:[%s2293_s3 + $0x80] sm:$0xff]  }
 0xce1   :  { %892 = vrot.lane.b32.xlu1 %v2143_v22, %s1889_s29 }
 0xce5   :  { %1787 = vrot.lane.b32.xlu1 %v1786_v13, %s1888_s28  ;;  %1695 = vmatmul.mubr.msk.bf16.vlgmr.msra.gmra.mrb[16].mxu0 %vm160_vm2, %v829_v12 }
 0xce6   :  { %1700 = vmatprep.mubr.msk.bf16.mxu0 %vm1887_vm1, %v1886_v15 }
 0xd53   :  { %v893_v23 = vpop.permute.xlu1 %892 }
 0xd54   :  { %v898_v24 = vsel %vm160_vm2, %v893_v23, 0 }
 0xd55   :  { %1699 = vmatpush3.bf16.xpose.msra.mxu0 %v898_v24 }
 0xd56   :  { %1704 = vmatprep.subr.bf16.mxu0 %v1886_v15 }
 0xd57   :  { %v1788_v0 = vpop.permute.xlu1 %1787 }
 0xd58   :  { %v1790_v25 = vunpack.i.h.bf16 %v1788_v0  ;;  %v1789_v26 = vunpack.i.l.bf16 %v1788_v0 }
 0xd5a   :  { %v830_v1 = vpack.c.bf16 %v1790_v25, %v1789_v26 }
 0xd5c   :  { %1701 = vmatmul.mubr.msk.bf16.vlgmr.msra.gmra.mrb[20].mxu0 %vm160_vm2, %v830_v1 }
 0xd5d   :  { %1706 = vmatprep.mubr.msk.bf16.mxu0 %vm1887_vm1, %v1886_v15 }
 0xdb8   :  { %v884_v27 = vpop.f32.mrb[16].mxu0 }
 0xdb9   :  { %v1696_v29 = vpop.f32.mrb[17].mxu0  ;;  %v885_v39 = vadd.f32 %v884_v27, %v1984_v59 }
 0xdba   :  { %v887_v30 = vpop.f32.mrb[18].mxu0 }
 0xdbb   :  { %v1697_v32 = vpop.f32.mrb[19].mxu0  ;;  %v888_v40 = vadd.f32 %v887_v30, %v1989_v61  ;;  %v941_v41 = vsel %vm160_vm2, %v885_v39, -inf }
 0xdbd   :  { %v944_v42 = vsel %vm160_vm2, %v888_v40, -inf }
 0xe2f   :  { %v934_v33 = vpop.f32.mrb[20].mxu0 }
 0xe30   :  { %v935_v34 = vadd.f32 %v934_v33, %v1984_v59  ;;  %v1702_v35 = vpop.f32.mrb[21].mxu0 }
 0xe31   :  { %v937_v36 = vpop.f32.mrb[22].mxu0 }
 0xe32   :  { %v938_v37 = vadd.f32 %v937_v36, %v1989_v61  ;;  %v1703_v14 = vpop.f32.mrb[23].mxu0  ;;  %v947_v38 = vsel %vm160_vm2, %v935_v34, -inf }
 0xe33   :  { %948 = vmax.xlane.f32.xlu1 %v947_v38 }
 0xe34   :  { %v950_v18 = vsel %vm160_vm2, %v938_v37, -inf }
 0xe35   :  { %951 = vmax.xlane.f32.xlu0 %v950_v18 }
 0xe39   :  { %942 = vmax.xlane.f32.xlu0 %v941_v41 }
 0xe3d   :  { %945 = vmax.xlane.f32.xlu0 %v944_v42 }
 0xec0   :  { %v949_v43 = vpop.xlane.xlu1 %948 }
 0xec1   :  { %v955_v45 = vsub.f32 %v935_v34, %v949_v43 }
 0xec2   :  { %v952_v46 = vpop.xlane.xlu0 %951 }
 0xec3   :  { %v961_v47 = vmul.f32 1.442695, %v955_v45  ;;  %v956_v44 = vsub.f32 %v938_v37, %v952_v46  ;;  %v1537_v37 = vld [vmem:[%s2294_s2 + $0xb] ss:$0 sm:$0xff] }
 0xec5   :  { %1858 = vpow2.f32 %v961_v47  ;;  %v963_v48 = vmul.f32 1.442695, %v956_v44 }
 0xec6   :  { %v943_v49 = vpop.xlane.xlu0 %942 }
 0xec7   :  { %1860 = vpow2.f32 %v963_v48  ;;  %v953_v59 = vsub.f32 %v885_v39, %v943_v49 }
 0xec9   :  { %v957_v50 = vmul.f32 1.442695, %v953_v59 }
 0xeca   :  { %v946_v51 = vpop.xlane.xlu0 %945 }
 0xecb   :  { %1862 = vpow2.f32 %v957_v50  ;;  %v954_v61 = vsub.f32 %v888_v40, %v946_v51 }
 0xecd   :  { %v959_v52 = vmul.f32 1.442695, %v954_v61 }
 0xecf   :  { %v1859_v53 = vpop.eup %1858  ;;  %1864 = vpow2.f32 %v959_v52  ;;  %v1814_v52 = vld [vmem:[%s2293_s3 + $0x90] sm:$0xff]  }
 0xed0   :  { %v971_v54 = vsel %vm160_vm2, %v1859_v53, 0.0 }
 0xed1   :  { %v1861_v55 = vpop.eup %1860  ;;  %972 = vadd.xlane.f32.xlu1 %v971_v54 }
 0xed2   :  { %v974_v56 = vsel %vm160_vm2, %v1861_v55, 0.0 }
 0xed3   :  { %975 = vadd.xlane.f32.xlu0 %v974_v56 }
 0xed5   :  { %v1863_v57 = vpop.eup %1862 }
 0xed6   :  { %v965_v58 = vsel %vm160_vm2, %v1863_v57, 0.0 }
 0xed7   :  { %966 = vadd.xlane.f32.xlu0 %v965_v58 }
 0xed9   :  { %v1865_v60 = vpop.eup %1864 }
 0xeda   :  { %v968_v62 = vsel %vm160_vm2, %v1865_v60, 0.0 }
 0xedb   :  { %969 = vadd.xlane.f32.xlu0 %v968_v62 }
 0xee2   :  { %1034 = vrot.lane.b32.xlu1 %v2143_v22, %s1890_s1 }
 0xef1   :  { %987 = vrot.lane.b32.xlu0 %v2137_v11, %s1890_s1 }
 0xf5e   :  { %v973_v63 = vpop.xlane.xlu1 %972 }
 0xf5f   :  { %1866 = vrcp.f32 %v973_v63 }
 0xf60   :  { %v976_v2 = vpop.xlane.xlu0 %975 }
 0xf61   :  { %1868 = vrcp.f32 %v976_v2  ;;  %v1541_v2 = vld [vmem:[%s2294_s2 + $0xc] ss:$0 sm:$0xff] }
 0xf62   :  { %v1035_v3 = vpop.permute.xlu1 %1034 }
 0xf63   :  { %1711 = vmatpush3.bf16.msra.mxu1 %v1035_v3 }
 0xf64   :  { %v967_v4 = vpop.xlane.xlu0 %966  ;;  %1724 = vmatprep.subr.bf16.mxu1 %v1886_v15 }
 0xf65   :  { %1870 = vrcp.f32 %v967_v4 }
 0xf68   :  { %v970_v5 = vpop.xlane.xlu0 %969 }
 0xf69   :  { %v1867_v6 = vpop.eup %1866  ;;  %1872 = vrcp.f32 %v970_v5 }
 0xf6a   :  { %v983_v8 = vmul.f32 %v1867_v6, %v1859_v53  ;;  %v1815_v53 = vld [vmem:[%s2293_s3 + $0x98] sm:$0xff]   ;;  %v1542_v6 = vld [vmem:[%s2294_s2 + $0xd] ss:$0 sm:$0xff] }
 0xf6b   :  { %v1869_v7 = vpop.eup %1868 }
 0xf6c   :  { %v984_v9 = vmul.f32 %v1869_v7, %v1861_v55  ;;  %v988_v10 = vpop.permute.xlu0 %987 }
 0xf6d   :  { %1705 = vmatpush3.bf16.msra.mxu0 %v988_v10 }
 0xf6e   :  { %v986_v12 = vpack.c.bf16 %v984_v9, %v983_v8  ;;  %1716 = vmatprep.subr.bf16.mxu0 %v1886_v15 }
 0xf6f   :  { %v1871_v11 = vpop.eup %1870 }
 0xf70   :  { %1713 = vmatmul.mubr.msk.bf16.vlgmr.msra.gmra.mrb[20].mxu1 %vm160_vm2, %v986_v12  ;;  %v981_v16 = vmul.f32 %v1871_v11, %v1863_v57  ;;  %v1816_v12 = vld [vmem:[%s2293_s3 + $0xa0] sm:$0xff]   ;;  %v1817_v11 = vld [vmem:[%s2293_s3 + $0xa8] sm:$0xff]  }
 0xf71   :  { %1728 = vmatprep.mubr.msk.bf16.mxu1 %vm1887_vm1, %v1886_v15  ;;  %1725 = vmatpush3.bf16.msra.mxu1 %v1814_v52 }
 0xf72   :  { %1726 = vmatprep.subr.bf16.mxu1 %v1886_v15 }
 0xf73   :  { %v1873_v13 = vpop.eup %1872 }
 0xf74   :  { %v982_v17 = vmul.f32 %v1873_v13, %v1865_v60  ;;  %v1818_v13 = vld [vmem:[%s2293_s3 + $0xb0] sm:$0xff]  }
 0xf75   :  { %1727 = vmatpush3.bf16.msra.mxu1 %v1815_v53 }
 0xf76   :  { %v985_v19 = vpack.c.bf16 %v982_v17, %v981_v16  ;;  %1752 = vmatprep.subr.bf16.mxu1 %v1886_v15  ;;  %v1819_v16 = vld [vmem:[%s2293_s3 + $0xb8] sm:$0xff]   ;;  %v1820_v17 = vld [vmem:[%s2293_s3 + $0xc0] sm:$0xff]  }
 0xf78   :  { %1707 = vmatmul.mubr.msk.bf16.vlgmr.msra.gmra.mrb[24].mxu0 %vm160_vm2, %v985_v19  ;;  %v1821_v19 = vld [vmem:[%s2293_s3 + $0xc8] sm:$0xff]  }
 0xf79   :  { %1720 = vmatprep.mubr.msk.bf16.mxu0 %vm1887_vm1, %v1886_v15  ;;  %1717 = vmatpush3.bf16.msra.mxu0 %v1812_v20  ;;  %v1822_v20 = vld [vmem:[%s2293_s3 + $0xd0] sm:$0xff]  }
 0xf7a   :  { %1718 = vmatprep.subr.bf16.mxu0 %v1886_v15 }
 0xf7d   :  { %1719 = vmatpush3.bf16.msra.mxu0 %v1813_v21  ;;  %v1823_v21 = vld [vmem:[%s2293_s3 + $0xd8] sm:$0xff]  }
 0xf7e   :  { %1732 = vmatprep.subr.bf16.mxu0 %v1886_v15 }
0x1043   :  { %v1074_v22 = vpop.f32.mrb[20].mxu1 }
0x1044   :  { %v1714_v23 = vpop.f32.mrb[21].mxu1 }
0x1045   :  { %v1077_v24 = vpop.f32.mrb[22].mxu1 }
0x1046   :  { %v1791_v0 = vpack.i.bf16 %v1077_v24, %v1074_v22  ;;  %v1715_v25 = vpop.f32.mrb[23].mxu1  ;;  %v1543_v22 = vld [vmem:[%s2294_s2 + $0xe] ss:$0 sm:$0xff] }
0x1048   :  { %1792 = vrot.lane.b32.xlu1 %v1791_v0, %s1891_s12 }
0x104b   :  { %v1027_v26 = vpop.f32.mrb[24].mxu0 }
0x104c   :  { %v1708_v1 = vpop.f32.mrb[25].mxu0 }
0x104d   :  { %v1030_v27 = vpop.f32.mrb[26].mxu0 }
0x104e   :  { %v1709_v29 = vpop.f32.mrb[27].mxu0 }
0x10ba   :  { %v1793_v30 = vpop.permute.xlu1 %1792 }
0x10bb   :  { %v1795_v32 = vunpack.i.h.bf16 %v1793_v30  ;;  %v1794_v33 = vunpack.i.l.bf16 %v1793_v30 }
0x10bd   :  { %v1090_v34 = vsel %vm160_vm2, %v1030_v27, %v1795_v32  ;;  %v1089_v35 = vsel %vm160_vm2, %v1027_v26, %v1794_v33 }
0x10be   :  { %v1091_v36 = vpack.c.bf16 %v1090_v34, %v1089_v35 }
0x10c0   :  { %1721 = vmatmul.mubr.msk.bf16.vlgmr.msra.gmra.mrb[28].mxu0 %vm30_vm0, %v1091_v36 }
0x10c1   :  { %1748 = vmatprep.mubr.msk.bf16.mxu0 %vm1887_vm1, %v1886_v15  ;;  %1733 = vmatpush3.bf16.msra.mxu0 %v1816_v12 }
0x10c2   :  { %1734 = vmatprep.subr.bf16.mxu0 %v1886_v15 }
0x10c5   :  { %1735 = vmatpush3.bf16.msra.mxu0 %v1817_v11  ;;  %v1556_v11 = vld [vmem:[%s2294_s2 + $0x10] ss:$0 sm:$0xff] }
0x10c6   :  { %1736 = vmatprep.subr.bf16.mxu0 %v1886_v15 }
0x10c9   :  { %1737 = vmatpush3.bf16.msra.mxu0 %v1818_v13 }
0x10ca   :  { %1738 = vmatprep.subr.bf16.mxu0 %v1886_v15 }
0x10cd   :  { %1739 = vmatpush3.bf16.msra.mxu0 %v1819_v16 }
0x10ce   :  { %1740 = vmatprep.subr.bf16.mxu0 %v1886_v15 }
0x10d1   :  { %1741 = vmatpush3.bf16.msra.mxu0 %v1820_v17 }
0x10d2   :  { %1742 = vmatprep.subr.bf16.mxu0 %v1886_v15 }
0x10d5   :  { %1743 = vmatpush3.bf16.msra.mxu0 %v1821_v19  ;;  %v1557_v19 = vld [vmem:[%s2294_s2 + $0x11] ss:$0 sm:$0xff] }
0x10d6   :  { %1744 = vmatprep.subr.bf16.mxu0 %v1886_v15 }
0x10d9   :  { %1745 = vmatpush3.bf16.msra.mxu0 %v1822_v20 }
0x10da   :  { %1746 = vmatprep.subr.bf16.mxu0 %v1886_v15 }
0x10dd   :  { %1747 = vmatpush3.bf16.msra.mxu0 %v1823_v21 }
0x1193   :  { %v1149_v14 = vpop.f32.mrb[28].mxu0 }
0x1194   :  { %v1150_v38 = vadd.f32 %v1537_v37, %v1149_v14  ;;  %v1722_v39 = vpop.f32.mrb[29].mxu0 }
0x1195   :  { %v1152_v18 = vpop.f32.mrb[30].mxu0 }
0x1196   :  { %v2199_v40 = vadd.f32 %v1150_v38, %v2104_v28  ;;  %v1153_v41 = vadd.f32 %v1537_v37, %v1152_v18  ;;  %v1723_v42 = vpop.f32.mrb[31].mxu0 }
0x1198   :  { %v2202_v43 = vadd.f32 %v1153_v41, %v2107_v31  ;;  %v1158_v45 = vsel %vm30_vm0, %v2199_v40, 0.0 }
0x1199   :  { %1159 = vadd.xlane.f32.xlu1 %v1158_v45 }
0x119a   :  { %v1161_v46 = vsel %vm30_vm0, %v2202_v43, 0.0 }
0x119b   :  { %1162 = vadd.xlane.f32.xlu0 %v1161_v46 }
0x1226   :  { %v1160_v47 = vpop.xlane.xlu1 %1159 }
0x1227   :  { %v1164_v44 = vmul.f32 0.03125, %v1160_v47 }
0x1228   :  { %v1163_v48 = vpop.xlane.xlu0 %1162 }
0x1229   :  { %v1166_v49 = vsub.f32 %v2199_v40, %v1164_v44  ;;  %v1165_v28 = vmul.f32 0.03125, %v1163_v48  ;;  %v1547_v48 = vld [vmem:[%s2294_s2 + $0xf] ss:$0 sm:$0xff] }
0x122b   :  { %v1167_v59 = vsub.f32 %v2202_v43, %v1165_v28  ;;  %v1168_v50 = vmul.f32 %v1166_v49, %v1166_v49 }
0x122d   :  { %v1170_v31 = vsel %vm30_vm0, %v1168_v50, 0.0  ;;  %v1169_v51 = vmul.f32 %v1167_v59, %v1167_v59 }
0x122e   :  { %1171 = vadd.xlane.f32.xlu1 %v1170_v31 }
0x122f   :  { %v1173_v61 = vsel %vm30_vm0, %v1169_v51, 0.0 }
0x1232   :  { %1174 = vadd.xlane.f32.xlu1 %v1173_v61 }
0x12bb   :  { %v1172_v54 = vpop.xlane.xlu1 %1171 }
0x12bc   :  { %v1176_v55 = vmul.f32 0.03125, %v1172_v54 }
0x12be   :  { %v1178_v56 = vadd.f32 1e-05, %v1176_v55 }
0x12bf   :  { %v1175_v57 = vpop.xlane.xlu1 %1174 }
0x12c0   :  { %1874 = vrsqrt.f32 %v1178_v56  ;;  %v1177_v58 = vmul.f32 0.03125, %v1175_v57 }
0x12c2   :  { %v1179_v60 = vadd.f32 1e-05, %v1177_v58 }
0x12c4   :  { %1876 = vrsqrt.f32 %v1179_v60 }
0x12ca   :  { %v1875_v62 = vpop.eup %1874 }
0x12cb   :  { %v1182_v63 = vmul.f32 %v1875_v62, %v1166_v49 }
0x12cd   :  { %v1188_v4 = vmul.f32 %v1541_v2, %v1182_v63 }
0x12ce   :  { %v1877_v3 = vpop.eup %1876 }
0x12cf   :  { %v1183_v5 = vmul.f32 %v1877_v3, %v1167_v59  ;;  %v1194_v8 = vadd.f32 %v1542_v6, %v1188_v4  ;;  %v1825_v4 = vld [vmem:[%s2293_s3 + $0xe8] sm:$0xff]  }
0x12d1   :  { %v1189_v7 = vmul.f32 %v1541_v2, %v1183_v5 }
0x12d3   :  { %v1195_v9 = vadd.f32 %v1542_v6, %v1189_v7 }
0x12d5   :  { %v1196_v10 = vpack.c.bf16 %v1195_v9, %v1194_v8 }
0x12d7   :  { %1729 = vmatmul.mubr.msk.bf16.vlgmr.msra.gmra.mrb[24].mxu1 %vm30_vm0, %v1196_v10 }
0x12d8   :  { %1756 = vmatprep.mubr.msk.bf16.mxu1 %vm1887_vm1, %v1886_v15 }
0x13aa   :  { %v1254_v23 = vpop.f32.mrb[24].mxu1 }
0x13ab   :  { %v1255_v24 = vadd.f32 %v1543_v22, %v1254_v23  ;;  %v1730_v0 = vpop.f32.mrb[25].mxu1 }
0x13ac   :  { %v1257_v25 = vpop.f32.mrb[26].mxu1 }
0x13ad   :  { %v1263_v26 = vmul.f32 0.044715, %v1255_v24  ;;  %v1258_v1 = vadd.f32 %v1543_v22, %v1257_v25  ;;  %v1731_v27 = vpop.f32.mrb[27].mxu1  ;;  %v1261_v41 = vmul.f32 0.5, %v1255_v24 }
0x13af   :  { %v1265_v29 = vmul.f32 %v1263_v26, %v1255_v24  ;;  %v1264_v30 = vmul.f32 0.044715, %v1258_v1  ;;  %v1262_v42 = vmul.f32 0.5, %v1258_v1 }
0x13b1   :  { %v1267_v32 = vmul.f32 %v1265_v29, %v1255_v24  ;;  %v1266_v33 = vmul.f32 %v1264_v30, %v1258_v1 }
0x13b3   :  { %v1269_v34 = vadd.f32 %v1267_v32, %v1255_v24  ;;  %v1268_v35 = vmul.f32 %v1266_v33, %v1258_v1 }
0x13b5   :  { %v1271_v36 = vmul.f32 0.7978846, %v1269_v34  ;;  %v1270_v37 = vadd.f32 %v1268_v35, %v1258_v1 }
0x13b7   :  { %1878 = vtanh.f32 %v1271_v36  ;;  %v1272_v14 = vmul.f32 0.7978846, %v1270_v37 }
0x13b9   :  { %1880 = vtanh.f32 %v1272_v14 }
0x13c1   :  { %v1879_v38 = vpop.eup %1878 }
0x13c2   :  { %v1275_v39 = vadd.f32 1.0, %v1879_v38 }
0x13c3   :  { %v1881_v18 = vpop.eup %1880 }
0x13c4   :  { %v1276_v45 = vadd.f32 1.0, %v1881_v18  ;;  %v1277_v46 = vmul.f32 %v1275_v39, %v1261_v41 }
0x13c6   :  { %v1278_v47 = vmul.f32 %v1276_v45, %v1262_v42 }
0x13c8   :  { %v1279_v44 = vpack.c.bf16 %v1278_v47, %v1277_v46 }
0x13ca   :  { %1749 = vmatmul.mubr.bf16.vlgmr.msra.gmra.mrb[32].mxu0 %v1279_v44 }
0x149d   :  { %v1382_v49 = vpop.f32.mrb[32].mxu0 }
0x149e   :  { %v1383_v28 = vadd.f32 %v1547_v48, %v1382_v49  ;;  %v1750_v59 = vpop.f32.mrb[33].mxu0 }
0x149f   :  { %v1385_v50 = vpop.f32.mrb[34].mxu0 }
0x14a0   :  { %v1386_v31 = vadd.f32 %v1547_v48, %v1385_v50  ;;  %v1751_v51 = vpop.f32.mrb[35].mxu0  ;;  %v1389_v61 = vadd.f32 %v1383_v28, %v2199_v40 }
0x14a2   :  { %v1393_v52 = vsel %vm30_vm0, %v1389_v61, 0.0  ;;  %v1390_v53 = vadd.f32 %v1386_v31, %v2202_v43  ;;  %v1824_v43 = vld [vmem:[%s2293_s3 + $0xe0] sm:$0xff]  }
0x14a3   :  { %1394 = vadd.xlane.f32.xlu0 %v1393_v52  ;;  %1753 = vmatpush3.bf16.msra.mxu1 %v1824_v43 }
0x14a4   :  { %v1396_v54 = vsel %vm30_vm0, %v1390_v53, 0.0  ;;  %1754 = vmatprep.subr.bf16.mxu1 %v1886_v15 }
0x14a5   :  { %1397 = vadd.xlane.f32.xlu1 %v1396_v54 }
0x14a7   :  { %1755 = vmatpush3.bf16.msra.mxu1 %v1825_v4 }
0x1530   :  { %v1395_v55 = vpop.xlane.xlu0 %1394 }
0x1531   :  { %v1399_v56 = vmul.f32 0.03125, %v1395_v55 }
0x1532   :  { %v1398_v57 = vpop.xlane.xlu1 %1397 }
0x1533   :  { %v1401_v58 = vsub.f32 %v1389_v61, %v1399_v56  ;;  %v1400_v60 = vmul.f32 0.03125, %v1398_v57 }
0x1535   :  { %v1402_v62 = vsub.f32 %v1390_v53, %v1400_v60  ;;  %v1403_v63 = vmul.f32 %v1401_v58, %v1401_v58 }
0x1537   :  { %v1405_v2 = vsel %vm30_vm0, %v1403_v63, 0.0  ;;  %v1404_v3 = vmul.f32 %v1402_v62, %v1402_v62 }
0x1538   :  { %1406 = vadd.xlane.f32.xlu0 %v1405_v2 }
0x1539   :  { %v1408_v40 = vsel %vm30_vm0, %v1404_v3, 0.0 }
0x153a   :  { %1409 = vadd.xlane.f32.xlu1 %v1408_v40 }
0x15c5   :  { %v1407_v5 = vpop.xlane.xlu0 %1406 }
0x15c6   :  { %v1411_v6 = vmul.f32 0.03125, %v1407_v5 }
0x15c7   :  { %v1410_v7 = vpop.xlane.xlu1 %1409 }
0x15c8   :  { %v1413_v8 = vadd.f32 1e-05, %v1411_v6  ;;  %v1412_v9 = vmul.f32 0.03125, %v1410_v7 }
0x15ca   :  { %1882 = vrsqrt.f32 %v1413_v8  ;;  %v1414_v10 = vadd.f32 1e-05, %v1412_v9 }
0x15cc   :  { %1884 = vrsqrt.f32 %v1414_v10 }
0x15d4   :  { %v1883_v12 = vpop.eup %1882 }
0x15d5   :  { %v1417_v13 = vmul.f32 %v1883_v12, %v1401_v58 }
0x15d6   :  { %v1885_v15 = vpop.eup %1884 }
0x15d7   :  { %v1423_v16 = vmul.f32 %v1556_v11, %v1417_v13  ;;  %v1418_v17 = vmul.f32 %v1885_v15, %v1402_v62 }
0x15d9   :  { %v1424_v20 = vmul.f32 %v1556_v11, %v1418_v17  ;;  %v1429_v21 = vadd.f32 %v1557_v19, %v1423_v16 }
0x15db   :  { %v1430_v22 = vadd.f32 %v1557_v19, %v1424_v20 }
0x15dd   :  { %v1431_v23 = vpack.c.bf16 %v1430_v22, %v1429_v21 }
0x15df   :  { %1757 = vmatmul.mubr.msk.bf16.vlgmr.msra.gmra.mrb[28].mxu1 %vm30_vm0, %v1431_v23 }
0x16b2   :  { %v1485_v24 = vpop.f32.mrb[28].mxu1 }
0x16b3   :  { %1492 = vst [vmem:[%s2296_s4] sm:$0xff] %v1485_v24  ;;  %v1758_v0 = vpop.f32.mrb[29].mxu1 }
0x16b4   :  { %v1488_v25 = vpop.f32.mrb[30].mxu1 }
0x16b5   :  { %1493 = vst [vmem:[%s2296_s4 + $0x8] sm:$0xff] %v1488_v25  ;;  %v1759_v26 = vpop.f32.mrb[31].mxu1 }

</bundles_post_ra>
